<compile_context>
chip_gen: v6e
topology: v6e:2x2x1
jax: 0.10.0
libtpu: 0.0.40
codegen_flags: <defaults>
</compile_context>

<pallas_src>
import functools

import jax
import jax.numpy as jnp
from jax import lax
from jax.experimental import pallas as pl
from jax.experimental.pallas import tpu as pltpu


def _round_up(x, m):
    return (x + m - 1) // m * m


def _largest_divisor_at_most(n, cap):
    for d in range(min(n, cap), 0, -1):
        if n % d == 0:
            return d
    return 1


@functools.lru_cache(maxsize=None)
def _roll_sign():
    """pltpu.roll sign convention: +1 == jnp.roll (rolled[i] = x[(i-shift)%n]).

    Probed once with concrete inputs, strictly outside any trace
    (jax.ensure_compile_time_eval), falling back to the documented jnp.roll
    convention if the probe cannot run.
    """
    def probe(x_ref, o_ref):
        o_ref[...] = pltpu.roll(x_ref[...], 1, 0)

    try:
        with jax.ensure_compile_time_eval():
            x = jnp.arange(8 * 128, dtype=jnp.float32).reshape(8, 128)
            out = pl.pallas_call(
                probe, out_shape=jax.ShapeDtypeStruct((8, 128), jnp.float32))(x)
            if bool(jnp.array_equal(out, jnp.roll(x, 1, axis=0))):
                return 1
            if bool(jnp.array_equal(out, jnp.roll(x, -1, axis=0))):
                return -1
    except Exception:
        pass
    return 1  # documented jnp.roll convention


@functools.lru_cache(maxsize=None)
def _buffered_supported():
    """Whether BlockSpec(pipeline_mode=pl.Buffered(1)) lowers on this JAX/TPU."""
    if not hasattr(pl, "Buffered"):
        return False

    def copy_kernel(x_ref, o_ref):
        o_ref[...] = x_ref[...]

    try:
        with jax.ensure_compile_time_eval():
            x = jnp.zeros((16, 128), jnp.float32)
            out = pl.pallas_call(
                copy_kernel,
                out_shape=jax.ShapeDtypeStruct((16, 128), jnp.float32),
                grid=(2,),
                in_specs=[pl.BlockSpec((8, 128), lambda i: (i, 0),
                                       pipeline_mode=pl.Buffered(1))],
                out_specs=pl.BlockSpec((8, 128), lambda i: (i, 0)),
            )(x)
            jax.block_until_ready(out)
        return True
    except Exception:
        return False


def _spec(block_shape, index_map, *, buffers=None):
    """BlockSpec with optional pipeline_mode=pl.Buffered(n) (if supported)."""
    if buffers is not None and _buffered_supported():
        try:
            return pl.BlockSpec(block_shape, index_map,
                                pipeline_mode=pl.Buffered(buffers))
        except TypeError:
            pass
    return pl.BlockSpec(block_shape, index_map)


def _vmem_capacity_bytes():
    try:
        return int(pltpu.get_tpu_info().vmem_capacity_bytes)
    except Exception:
        return 64 << 20  # conservative: v7x per-TensorCore VMEM


def _default_cout_tile():
    try:
        kind = jax.devices()[0].device_kind.lower()
    except Exception:
        return 256
    # v5 MXUs are 128x128: N=128 already saturates them while halving the
    # weight-tile VMEM on the most HBM-bound generation.
    return 128 if "v5" in kind else 256


def _conv_kernel(x_ref, w_ref, b_ref, o_ref, *, KH, KW, pad, left_pad, w_out,
                 wp, tile_h, inner_h, n_chunks, roll_sign, apply_relu):
    """One (batch, Cout-tile, H-tile) grid step of the KxK stride-1 SAME conv.

    x_ref : (1, Hp*wp, Cin_p)       flattened zero-padded frame (reused over j, i)
    w_ref : (KH*KW, Cin_p, cout_t)  folded weight tile (reused over i)
    b_ref : (1, cout_t)             f32 bias
    o_ref : (1, tile_h, w_out, cout_t)
    """
    cout_t = o_ref.shape[3]
    row0 = pl.program_id(2) * tile_h           # first output row of this tile
    m = inner_h * wp                           # flattened rows per chunk
    bias = b_ref[...]                          # (1, cout_t) f32, hoisted

    def chunk(c, carry):
        h0 = c * inner_h
        acc = None
        for kw in range(KW):
            # Accumulate the KH un-shifted taps first, then shift the narrow
            # (m, cout_t) f32 partial once with an XLU roll (far fewer rolled
            # bytes than rolling the wide packed-bf16 input per (kh, kw) tap).
            partial = None
            for kh in range(KH):
                # 8-aligned sublane slice of the flattened frame (wp % 8 == 0).
                start = pl.multiple_of((row0 + h0 + kh) * wp, 8)
                base = x_ref[0, pl.ds(start, m), :]            # (m, Cin_p)
                d = jnp.dot(base, w_ref[kh * KW + kw],
                            preferred_element_type=jnp.float32)
                partial = d if partial is None else partial + d
            # Want contrib[p] = partial[p + (kw - pad)].  Wrapped / cross-row
            # entries of the roll only land in the halo/alignment columns
            # [0, left_pad) u [left_pad + w_out, wp), which the store below
            # crops away (requires wp >= left_pad + w_out + pad and
            # left_pad >= pad -- asserted in the wrapper).
            shift = (roll_sign * (pad - kw)) % m
            if shift:
                partial = pltpu.roll(partial, shift, 0)
            acc = partial if acc is None else acc + partial
        acc = acc + bias                       # broadcast (1, cout_t) add
        if apply_relu:
            acc = jnp.maximum(acc, 0.0)
        # left_pad is a multiple of 8 -> the crop is sublane-aligned (no
        # relayout before the lane-dense store).
        tile = acc.reshape(inner_h, wp, cout_t)[:, left_pad:left_pad + w_out, :]
        o_ref[0, pl.ds(h0, inner_h), :, :] = tile.astype(o_ref.dtype)
        return carry

    if n_chunks == 1:
        chunk(0, 0)
    else:
        # fori_loop (not an unrolled Python for) bounds vreg live ranges.
        lax.fori_loop(0, n_chunks, chunk, 0)


def conv2d_relu_nhwc(x_nhwc, weight, bias=None, *, relu=True,
                     compute_dtype=jnp.bfloat16, cout_tile=None,
                     tile_h_cap=32, acc_target_elems=32 * 1024):
    """Stride-1 SAME KxK conv + bias (+ReLU) on an NHWC activation.

    x_nhwc : (B, H, W, Cin)
    weight : (Cout, Cin, KH, KW)   -- PyTorch OIHW layout
    bias   : (Cout,) or None
    returns: (B, H, W, Cout) in x_nhwc.dtype
    """
    B, H, W, Cin = x_nhwc.shape
    Cout, Cin_w, KH, KW = weight.shape
    assert Cin == Cin_w
    assert KH == KW and KH % 2 == 1, "odd square kernels, stride 1 only"
    pad = (KH - 1) // 2
    out_dtype = x_nhwc.dtype
    if bias is None:
        bias = jnp.zeros((Cout,), jnp.float32)

    LANE = 128
    csize = jnp.dtype(compute_dtype).itemsize
    osize = jnp.dtype(out_dtype).itemsize
    Cin_p = _round_up(Cin, LANE)
    Cout_p = _round_up(Cout, LANE)

    # Left halo padded to a whole sublane group so the in-kernel crop start is
    # 8-aligned; right side gets >= pad zero columns plus alignment columns.
    left_pad = _round_up(pad, 8) if pad else 0
    Wp = _round_up(left_pad + W + pad, 8)
    Hp = H + 2 * pad
    # Correctness of the roll-wraparound trick (see _conv_kernel) is tied to:
    assert left_pad % 8 == 0 and left_pad >= pad
    assert Wp % 8 == 0 and Wp >= left_pad + W + pad

    frame_bytes = Hp * Wp * Cin_p * csize
    vmem_cap = _vmem_capacity_bytes()
    budget = vmem_cap - (8 << 20)

    # ---- Cout tiling: per-generation default, lane-dense, full-weight
    #      resident when the folded weight comfortably fits (v6e-style).
    cout_t = cout_tile if cout_tile is not None else _default_cout_tile()
    cout_t = min(_round_up(cout_t, LANE), Cout_p)
    if Cout_p % cout_t:
        cout_t = LANE                       # LANE always divides Cout_p
    full_w_bytes = KH * KW * Cin_p * Cout_p * csize
    if cout_t < Cout_p and full_w_bytes + frame_bytes + (16 << 20) <= budget:
        cout_t = Cout_p
    n_j = Cout_p // cout_t

    # ---- H tiling / accumulator chunking (acc kept <= ~half the vreg file).
    tile_h = _largest_divisor_at_most(H, tile_h_cap)
    inner_h = max(1, min(tile_h, acc_target_elems // (Wp * cout_t)))
    while tile_h % inner_h:
        inner_h -= 1
    n_chunks = tile_h // inner_h
    n_i = H // tile_h

    # ---- layout plumbing (single fused XLA pad/convert). Keep the encoder
    #      NHWC end-to-end so no NCHW<->NHWC transposes surround this op.
    x_pad = jnp.pad(x_nhwc, ((0, 0), (pad, pad),
                             (left_pad, Wp - W - left_pad),
                             (0, Cin_p - Cin)))
    x_flat = x_pad.astype(compute_dtype).reshape(B, Hp * Wp, Cin_p)

    w_hwio = jnp.transpose(weight, (2, 3, 1, 0))
    w_pad = jnp.pad(w_hwio, ((0, 0), (0, 0), (0, Cin_p - Cin),
                             (0, Cout_p - Cout)))
    w_fold = w_pad.astype(compute_dtype).reshape(KH * KW, Cin_p, Cout_p)

    b_pad = jnp.pad(bias, (0, Cout_p - Cout)).astype(jnp.float32)
    b_pad = b_pad.reshape(1, Cout_p)

    # ---- VMEM accounting, clamped against real capacity.
    buffered = _buffered_supported()
    w_tile_bytes = KH * KW * Cin_p * cout_t * csize
    out_tile_bytes = tile_h * W * cout_t * osize
    needed = (frame_bytes * (1 if buffered else 2)
              + w_tile_bytes * (1 if (buffered and n_j == 1) else 2)
              + 2 * out_tile_bytes + 2 * cout_t * 4)
    # TODO(synk): for frames that exceed VMEM (large decoder maps on v7x),
    #             switch to an H-halo-tiled input (manual make_async_copy ring)
    #             instead of whole-frame residency.
    if needed > budget:
        raise ValueError(
            f"padded frame + tiles need {needed} B of VMEM > budget {budget} B; "
            "halo-tiled input path not implemented")
    vmem_limit = int(min(max(needed + (16 << 20), 32 << 20), budget))

    # Grid: H-tile axis fastest so weight/bias (index = j only) are not
    # re-fetched per step; all axes independent -> "parallel" (v7x megacore
    # shards them; B*n_j*n_i >= 2 for realistic encoder shapes).
    grid = (B, n_j, n_i)

    kernel = functools.partial(
        _conv_kernel, KH=KH, KW=KW, pad=pad, left_pad=left_pad, w_out=W,
        wp=Wp, tile_h=tile_h, inner_h=inner_h, n_chunks=n_chunks,
        roll_sign=_roll_sign(), apply_relu=relu)

    cost = pl.CostEstimate(
        flops=2 * B * H * W * Cout_p * KH * KW * Cin_p,
        transcendentals=0,
        # Post-reorder traffic: frame + full folded weight + bias streamed once
        # per batch element; output written once.
        bytes_accessed=int(B * frame_bytes + B * full_w_bytes
                           + B * Cout_p * 4 + B * H * W * Cout_p * osize))

    out = pl.pallas_call(
        kernel,
        out_shape=jax.ShapeDtypeStruct((B, H, W, Cout_p), out_dtype),
        grid=grid,
        in_specs=[
            # Whole padded frame; index constant over (j, i) -> DMA'd once per
            # batch element.  Buffered(1): double-buffering a block whose index
            # never changes inside the inner loops only wastes VMEM.
            _spec((1, Hp * Wp, Cin_p), lambda b, j, i: (b, 0, 0), buffers=1),
            # Weight tile depends only on the slow Cout-tile axis.  Keep the
            # default 2 buffers when there are multiple Cout tiles (prefetch
            # of the next tile); single-buffer when fully resident.
            _spec((KH * KW, Cin_p, cout_t), lambda b, j, i: (0, 0, j),
                  buffers=1 if n_j == 1 else None),
            _spec((1, cout_t), lambda b, j, i: (0, j), buffers=1),
        ],
        out_specs=pl.BlockSpec((1, tile_h, W, cout_t),
                               lambda b, j, i: (b, i, 0, j)),
        compiler_params=pltpu.CompilerParams(
            dimension_semantics=("parallel", "parallel", "parallel"),
            vmem_limit_bytes=vmem_limit),
        cost_estimate=cost,
    )(x_flat, w_fold, b_pad)

    if Cout_p != Cout:
        out = out[..., :Cout]
    return out


def conv_forward(x_nchw, weight, bias, *, relu=True, **kwargs):
    """PyTorch-convention entry point: NCHW in, NCHW out.

    Inside ImageEncoderViT the activations are already NHWC (PatchEmbed
    permutes to NHWC), so prefer `conv2d_relu_nhwc` directly and skip these
    two transpose passes.
    """
    x_nhwc = jnp.transpose(x_nchw, (0, 2, 3, 1))
    out = conv2d_relu_nhwc(x_nhwc, weight, bias, relu=relu, **kwargs)
    return jnp.transpose(out, (0, 3, 1, 2))


def _reference_conv(x_nchw, weight, bias, relu=True,
                    compute_dtype=jnp.bfloat16):
    # Pure-JAX reference with the same bf16-operand / f32-accumulate recipe.
    out = jax.lax.conv_general_dilated(
        x_nchw.astype(compute_dtype), weight.astype(compute_dtype),
        window_strides=(1, 1), padding="SAME",
        dimension_numbers=("NCHW", "OIHW", "NCHW"),
        preferred_element_type=jnp.float32)
    out = out + bias.astype(jnp.float32).reshape(1, -1, 1, 1)
    if relu:
        out = jnp.maximum(out, 0.0)
    return out.astype(x_nchw.dtype)


if __name__ == "__main__":
    # Small synthetic shapes consistent with the conv building block.
    inp_dim, out_dim, kernel_size = 4, 8, 3
    B, H, W = 2, 16, 16

    key = jax.random.PRNGKey(0)
    kx, kwt, kb = jax.random.split(key, 3)

    # Deterministic init mimicking nn.Conv2d default (uniform bound).
    fan_in = inp_dim * kernel_size * kernel_size
    bound = 1.0 / (fan_in ** 0.5)
    weight = jax.random.uniform(
        kwt, (out_dim, inp_dim, kernel_size, kernel_size),
        jnp.float32, minval=-bound, maxval=bound)
    bias = jax.random.uniform(kb, (out_dim,), jnp.float32,
                              minval=-bound, maxval=bound)
    x = jax.random.normal(kx, (B, inp_dim, H, W), jnp.float32)

    out = conv_forward(x, weight, bias, relu=True)
    out = jax.block_until_ready(out)

    ref = _reference_conv(x, weight, bias, relu=True)
    assert out.shape == (B, out_dim, H, W)
    max_err = float(jnp.max(jnp.abs(out - ref)))
    assert jnp.allclose(out, ref, atol=1e-2, rtol=1e-2), max_err

    print("KERNEL_OK")
</pallas_src>

<mosaic_0001>
module attributes {stable_mosaic.version = 11 : i64} {
  func.func @copy_kernel(%arg0: i32, %arg1: memref<8x128xf32, #tpu.memory_space<vmem>>, %arg2: memref<8x128xf32, #tpu.memory_space<vmem>>) attributes {dimension_semantics = [#tpu.dimension_semantics<arbitrary>], iteration_bounds = array<i64: 2>, scalar_prefetch = 0 : i64, scratch_operands = 0 : i64, tpu.core_type = #tpu.core_type<tc>, window_params = [{pipeline_mode = #tpu.pipeline_mode<synchronous>, transform_indices = @transform_0, window_bounds = array<i64: 8, 128>}, {transform_indices = @transform_1, window_bounds = array<i64: 8, 128>}]} {
    %c0 = arith.constant 0 : index
    %c0_0 = arith.constant 0 : index
    %0 = vector.load %arg1[%c0, %c0_0] : memref<8x128xf32, #tpu.memory_space<vmem>>, vector<8x128xf32>
    %c0_1 = arith.constant 0 : index
    %c0_2 = arith.constant 0 : index
    %1 = vector.load %arg2[%c0_1, %c0_2] : memref<8x128xf32, #tpu.memory_space<vmem>>, vector<8x128xf32>
    tpu.vector_store %arg2[%c0_1, %c0_2], %0 {strides = array<i32>} : memref<8x128xf32, #tpu.memory_space<vmem>>, vector<8x128xf32>,
    return
  }
  func.func @transform_0(%arg0: i32) -> (i32, i32) {
    %c0_i32 = arith.constant 0 : i32
    %c0_i32_0 = arith.constant 0 : i32
    return %arg0, %c0_i32 : i32, i32
  }
  func.func @transform_1(%arg0: i32) -> (i32, i32) {
    %c0_i32 = arith.constant 0 : i32
    %c0_i32_0 = arith.constant 0 : i32
    return %arg0, %c0_i32 : i32, i32
  }
}

module attributes {stable_mosaic.version = 11 : i64} {
  func.func @probe(%arg0: memref<8x128xf32, #tpu.memory_space<vmem>>, %arg1: memref<8x128xf32, #tpu.memory_space<vmem>>) attributes {dimension_semantics = [], scalar_prefetch = 0 : i64, scratch_operands = 0 : i64, tpu.core_type = #tpu.core_type<tc>} {
    %c0 = arith.constant 0 : index
    %c0_0 = arith.constant 0 : index
    %0 = vector.load %arg0[%c0, %c0_0] : memref<8x128xf32, #tpu.memory_space<vmem>>, vector<8x128xf32>
    %c1_i32 = arith.constant 1 : i32
    %1 = tpu.dynamic_rotate %0 by %c1_i32 dim 0 : vector<8x128xf32>, i32 -> vector<8x128xf32>
    %c0_1 = arith.constant 0 : index
    %c0_2 = arith.constant 0 : index
    %2 = vector.load %arg1[%c0_1, %c0_2] : memref<8x128xf32, #tpu.memory_space<vmem>>, vector<8x128xf32>
    tpu.vector_store %arg1[%c0_1, %c0_2], %1 {strides = array<i32>} : memref<8x128xf32, #tpu.memory_space<vmem>>, vector<8x128xf32>,
    return
  }
}

module attributes {stable_mosaic.version = 11 : i64} {
  func.func @_conv_kernel(%arg0: i32, %arg1: i32, %arg2: i32, %arg3: memref<1x576x128xbf16, #tpu.memory_space<vmem>>, %arg4: memref<9x128x128xbf16, #tpu.memory_space<vmem>>, %arg5: memref<1x128xf32, #tpu.memory_space<vmem>>, %arg6: memref<1x16x16x128xf32, #tpu.memory_space<vmem>>) attributes {dimension_semantics = [#tpu.dimension_semantics<parallel>, #tpu.dimension_semantics<parallel>, #tpu.dimension_semantics<parallel>], iteration_bounds = array<i64: 2, 1, 1>, scalar_prefetch = 0 : i64, scratch_operands = 0 : i64, tpu.core_type = #tpu.core_type<tc>, window_params = [{transform_indices = @transform_0, window_bounds = array<i64: 1, 576, 128>}, {transform_indices = @transform_1, window_bounds = array<i64: 9, 128, 128>}, {transform_indices = @transform_2, window_bounds = array<i64: 1, 128>}, {transform_indices = @transform_3, window_bounds = array<i64: 1, 16, 16, 128>}]} {
    %c16_i32 = arith.constant 16 : i32
    %0 = arith.muli %arg2, %c16_i32 : i32
    %c0 = arith.constant 0 : index
    %c0_0 = arith.constant 0 : index
    %1 = vector.load %arg5[%c0, %c0_0] : memref<1x128xf32, #tpu.memory_space<vmem>>, vector<1x128xf32>
    %c0_i32 = arith.constant 0 : i32
    %c2_i32 = arith.constant 2 : i32
    %2 = arith.addi %c0_i32, %c2_i32 : i32
    %c1_i32 = arith.constant 1 : i32
    scf.for %arg7 = %c0_i32 to %2 step %c1_i32  : i32 {
      %c8_i32 = arith.constant 8 : i32
      %3 = arith.muli %arg7, %c8_i32 : i32
      %4 = arith.addi %0, %3 : i32
      %c0_i32_2 = arith.constant 0 : i32
      %5 = arith.addi %4, %c0_i32_2 : i32
      %c32_i32 = arith.constant 32 : i32
      %6 = arith.muli %5, %c32_i32 : i32
      %7 = tpu.assume_multiple %6, 8 : i32
      %c0_3 = arith.constant 0 : index
      %8 = arith.index_cast %7 : i32 to index
      %c0_4 = arith.constant 0 : index
      %9 = vector.load %arg3[%c0_3, %8, %c0_4] : memref<1x576x128xbf16, #tpu.memory_space<vmem>>, vector<1x256x128xbf16>
      %10 = vector.shape_cast %9 : vector<1x256x128xbf16> to vector<256x128xbf16>
      %c0_5 = arith.constant 0 : index
      %c0_6 = arith.constant 0 : index
      %c0_7 = arith.constant 0 : index
      %11 = vector.load %arg4[%c0_5, %c0_6, %c0_7] : memref<9x128x128xbf16, #tpu.memory_space<vmem>>, vector<1x128x128xbf16>
      %12 = vector.shape_cast %11 : vector<1x128x128xbf16> to vector<128x128xbf16>
      %cst = arith.constant dense<0.000000e+00> : vector<256x128xf32>
      %13 = tpu.matmul %10, %12, %cst {dimension_numbers = #tpu.dot_dimension_numbers<[1], [0], [0], [1], [0, 0, 1, 1], [], []>} : vector<256x128xbf16>, vector<128x128xbf16>, vector<256x128xf32> -> vector<256x128xf32>
      %14 = arith.addi %0, %3 : i32
      %c1_i32_8 = arith.constant 1 : i32
      %15 = arith.addi %14, %c1_i32_8 : i32
      %c32_i32_9 = arith.constant 32 : i32
      %16 = arith.muli %15, %c32_i32_9 : i32
      %17 = tpu.assume_multiple %16, 8 : i32
      %c0_10 = arith.constant 0 : index
      %18 = arith.index_cast %17 : i32 to index
      %c0_11 = arith.constant 0 : index
      %19 = vector.load %arg3[%c0_10, %18, %c0_11] : memref<1x576x128xbf16, #tpu.memory_space<vmem>>, vector<1x256x128xbf16>
      %20 = vector.shape_cast %19 : vector<1x256x128xbf16> to vector<256x128xbf16>
      %c3 = arith.constant 3 : index
      %c0_12 = arith.constant 0 : index
      %c0_13 = arith.constant 0 : index
      %21 = vector.load %arg4[%c3, %c0_12, %c0_13] : memref<9x128x128xbf16, #tpu.memory_space<vmem>>, vector<1x128x128xbf16>
      %22 = vector.shape_cast %21 : vector<1x128x128xbf16> to vector<128x128xbf16>
      %cst_14 = arith.constant dense<0.000000e+00> : vector<256x128xf32>
      %23 = tpu.matmul %20, %22, %cst_14 {dimension_numbers = #tpu.dot_dimension_numbers<[1], [0], [0], [1], [0, 0, 1, 1], [], []>} : vector<256x128xbf16>, vector<128x128xbf16>, vector<256x128xf32> -> vector<256x128xf32>
      %24 = arith.addf %13, %23 : vector<256x128xf32>
      %25 = arith.addi %0, %3 : i32
      %c2_i32_15 = arith.constant 2 : i32
      %26 = arith.addi %25, %c2_i32_15 : i32
      %c32_i32_16 = arith.constant 32 : i32
      %27 = arith.muli %26, %c32_i32_16 : i32
      %28 = tpu.assume_multiple %27, 8 : i32
      %c0_17 = arith.constant 0 : index
      %29 = arith.index_cast %28 : i32 to index
      %c0_18 = arith.constant 0 : index
      %30 = vector.load %arg3[%c0_17, %29, %c0_18] : memref<1x576x128xbf16, #tpu.memory_space<vmem>>, vector<1x256x128xbf16>
      %31 = vector.shape_cast %30 : vector<1x256x128xbf16> to vector<256x128xbf16>
      %c6 = arith.constant 6 : index
      %c0_19 = arith.constant 0 : index
      %c0_20 = arith.constant 0 : index
      %32 = vector.load %arg4[%c6, %c0_19, %c0_20] : memref<9x128x128xbf16, #tpu.memory_space<vmem>>, vector<1x128x128xbf16>
      %33 = vector.shape_cast %32 : vector<1x128x128xbf16> to vector<128x128xbf16>
      %cst_21 = arith.constant dense<0.000000e+00> : vector<256x128xf32>
      %34 = tpu.matmul %31, %33, %cst_21 {dimension_numbers = #tpu.dot_dimension_numbers<[1], [0], [0], [1], [0, 0, 1, 1], [], []>} : vector<256x128xbf16>, vector<128x128xbf16>, vector<256x128xf32> -> vector<256x128xf32>
      %35 = arith.addf %24, %34 : vector<256x128xf32>
      %c1_i32_22 = arith.constant 1 : i32
      %36 = tpu.dynamic_rotate %35 by %c1_i32_22 dim 0 : vector<256x128xf32>, i32 -> vector<256x128xf32>
      %37 = arith.addi %0, %3 : i32
      %c0_i32_23 = arith.constant 0 : i32
      %38 = arith.addi %37, %c0_i32_23 : i32
      %c32_i32_24 = arith.constant 32 : i32
      %39 = arith.muli %38, %c32_i32_24 : i32
      %40 = tpu.assume_multiple %39, 8 : i32
      %c0_25 = arith.constant 0 : index
      %41 = arith.index_cast %40 : i32 to index
      %c0_26 = arith.constant 0 : index
      %42 = vector.load %arg3[%c0_25, %41, %c0_26] : memref<1x576x128xbf16, #tpu.memory_space<vmem>>, vector<1x256x128xbf16>
      %43 = vector.shape_cast %42 : vector<1x256x128xbf16> to vector<256x128xbf16>
      %c1 = arith.constant 1 : index
      %c0_27 = arith.constant 0 : index
      %c0_28 = arith.constant 0 : index
      %44 = vector.load %arg4[%c1, %c0_27, %c0_28] : memref<9x128x128xbf16, #tpu.memory_space<vmem>>, vector<1x128x128xbf16>
      %45 = vector.shape_cast %44 : vector<1x128x128xbf16> to vector<128x128xbf16>
      %cst_29 = arith.constant dense<0.000000e+00> : vector<256x128xf32>
      %46 = tpu.matmul %43, %45, %cst_29 {dimension_numbers = #tpu.dot_dimension_numbers<[1], [0], [0], [1], [0, 0, 1, 1], [], []>} : vector<256x128xbf16>, vector<128x128xbf16>, vector<256x128xf32> -> vector<256x128xf32>
      %47 = arith.addi %0, %3 : i32
      %c1_i32_30 = arith.constant 1 : i32
      %48 = arith.addi %47, %c1_i32_30 : i32
      %c32_i32_31 = arith.constant 32 : i32
      %49 = arith.muli %48, %c32_i32_31 : i32
      %50 = tpu.assume_multiple %49, 8 : i32
      %c0_32 = arith.constant 0 : index
      %51 = arith.index_cast %50 : i32 to index
      %c0_33 = arith.constant 0 : index
      %52 = vector.load %arg3[%c0_32, %51, %c0_33] : memref<1x576x128xbf16, #tpu.memory_space<vmem>>, vector<1x256x128xbf16>
      %53 = vector.shape_cast %52 : vector<1x256x128xbf16> to vector<256x128xbf16>
      %c4 = arith.constant 4 : index
      %c0_34 = arith.constant 0 : index
      %c0_35 = arith.constant 0 : index
      %54 = vector.load %arg4[%c4, %c0_34, %c0_35] : memref<9x128x128xbf16, #tpu.memory_space<vmem>>, vector<1x128x128xbf16>
      %55 = vector.shape_cast %54 : vector<1x128x128xbf16> to vector<128x128xbf16>
      %cst_36 = arith.constant dense<0.000000e+00> : vector<256x128xf32>
      %56 = tpu.matmul %53, %55, %cst_36 {dimension_numbers = #tpu.dot_dimension_numbers<[1], [0], [0], [1], [0, 0, 1, 1], [], []>} : vector<256x128xbf16>, vector<128x128xbf16>, vector<256x128xf32> -> vector<256x128xf32>
      %57 = arith.addf %46, %56 : vector<256x128xf32>
      %58 = arith.addi %0, %3 : i32
      %c2_i32_37 = arith.constant 2 : i32
      %59 = arith.addi %58, %c2_i32_37 : i32
      %c32_i32_38 = arith.constant 32 : i32
      %60 = arith.muli %59, %c32_i32_38 : i32
      %61 = tpu.assume_multiple %60, 8 : i32
      %c0_39 = arith.constant 0 : index
      %62 = arith.index_cast %61 : i32 to index
      %c0_40 = arith.constant 0 : index
      %63 = vector.load %arg3[%c0_39, %62, %c0_40] : memref<1x576x128xbf16, #tpu.memory_space<vmem>>, vector<1x256x128xbf16>
      %64 = vector.shape_cast %63 : vector<1x256x128xbf16> to vector<256x128xbf16>
      %c7 = arith.constant 7 : index
      %c0_41 = arith.constant 0 : index
      %c0_42 = arith.constant 0 : index
      %65 = vector.load %arg4[%c7, %c0_41, %c0_42] : memref<9x128x128xbf16, #tpu.memory_space<vmem>>, vector<1x128x128xbf16>
      %66 = vector.shape_cast %65 : vector<1x128x128xbf16> to vector<128x128xbf16>
      %cst_43 = arith.constant dense<0.000000e+00> : vector<256x128xf32>
      %67 = tpu.matmul %64, %66, %cst_43 {dimension_numbers = #tpu.dot_dimension_numbers<[1], [0], [0], [1], [0, 0, 1, 1], [], []>} : vector<256x128xbf16>, vector<128x128xbf16>, vector<256x128xf32> -> vector<256x128xf32>
      %68 = arith.addf %57, %67 : vector<256x128xf32>
      %69 = arith.addf %36, %68 : vector<256x128xf32>
      %70 = arith.addi %0, %3 : i32
      %c0_i32_44 = arith.constant 0 : i32
      %71 = arith.addi %70, %c0_i32_44 : i32
      %c32_i32_45 = arith.constant 32 : i32
      %72 = arith.muli %71, %c32_i32_45 : i32
      %73 = tpu.assume_multiple %72, 8 : i32
      %c0_46 = arith.constant 0 : index
      %74 = arith.index_cast %73 : i32 to index
      %c0_47 = arith.constant 0 : index
      %75 = vector.load %arg3[%c0_46, %74, %c0_47] : memref<1x576x128xbf16, #tpu.memory_space<vmem>>, vector<1x256x128xbf16>
      %76 = vector.shape_cast %75 : vector<1x256x128xbf16> to vector<256x128xbf16>
      %c2 = arith.constant 2 : index
      %c0_48 = arith.constant 0 : index
      %c0_49 = arith.constant 0 : index
      %77 = vector.load %arg4[%c2, %c0_48, %c0_49] : memref<9x128x128xbf16, #tpu.memory_space<vmem>>, vector<1x128x128xbf16>
      %78 = vector.shape_cast %77 : vector<1x128x128xbf16> to vector<128x128xbf16>
      %cst_50 = arith.constant dense<0.000000e+00> : vector<256x128xf32>
      %79 = tpu.matmul %76, %78, %cst_50 {dimension_numbers = #tpu.dot_dimension_numbers<[1], [0], [0], [1], [0, 0, 1, 1], [], []>} : vector<256x128xbf16>, vector<128x128xbf16>, vector<256x128xf32> -> vector<256x128xf32>
      %80 = arith.addi %0, %3 : i32
      %c1_i32_51 = arith.constant 1 : i32
      %81 = arith.addi %80, %c1_i32_51 : i32
      %c32_i32_52 = arith.constant 32 : i32
      %82 = arith.muli %81, %c32_i32_52 : i32
      %83 = tpu.assume_multiple %82, 8 : i32
      %c0_53 = arith.constant 0 : index
      %84 = arith.index_cast %83 : i32 to index
      %c0_54 = arith.constant 0 : index
      %85 = vector.load %arg3[%c0_53, %84, %c0_54] : memref<1x576x128xbf16, #tpu.memory_space<vmem>>, vector<1x256x128xbf16>
      %86 = vector.shape_cast %85 : vector<1x256x128xbf16> to vector<256x128xbf16>
      %c5 = arith.constant 5 : index
      %c0_55 = arith.constant 0 : index
      %c0_56 = arith.constant 0 : index
      %87 = vector.load %arg4[%c5, %c0_55, %c0_56] : memref<9x128x128xbf16, #tpu.memory_space<vmem>>, vector<1x128x128xbf16>
      %88 = vector.shape_cast %87 : vector<1x128x128xbf16> to vector<128x128xbf16>
      %cst_57 = arith.constant dense<0.000000e+00> : vector<256x128xf32>
      %89 = tpu.matmul %86, %88, %cst_57 {dimension_numbers = #tpu.dot_dimension_numbers<[1], [0], [0], [1], [0, 0, 1, 1], [], []>} : vector<256x128xbf16>, vector<128x128xbf16>, vector<256x128xf32> -> vector<256x128xf32>
      %90 = arith.addf %79, %89 : vector<256x128xf32>
      %91 = arith.addi %0, %3 : i32
      %c2_i32_58 = arith.constant 2 : i32
      %92 = arith.addi %91, %c2_i32_58 : i32
      %c32_i32_59 = arith.constant 32 : i32
      %93 = arith.muli %92, %c32_i32_59 : i32
      %94 = tpu.assume_multiple %93, 8 : i32
      %c0_60 = arith.constant 0 : index
      %95 = arith.index_cast %94 : i32 to index
      %c0_61 = arith.constant 0 : index
      %96 = vector.load %arg3[%c0_60, %95, %c0_61] : memref<1x576x128xbf16, #tpu.memory_space<vmem>>, vector<1x256x128xbf16>
      %97 = vector.shape_cast %96 : vector<1x256x128xbf16> to vector<256x128xbf16>
      %c8 = arith.constant 8 : index
      %c0_62 = arith.constant 0 : index
      %c0_63 = arith.constant 0 : index
      %98 = vector.load %arg4[%c8, %c0_62, %c0_63] : memref<9x128x128xbf16, #tpu.memory_space<vmem>>, vector<1x128x128xbf16>
      %99 = vector.shape_cast %98 : vector<1x128x128xbf16> to vector<128x128xbf16>
      %cst_64 = arith.constant dense<0.000000e+00> : vector<256x128xf32>
      %100 = tpu.matmul %97, %99, %cst_64 {dimension_numbers = #tpu.dot_dimension_numbers<[1], [0], [0], [1], [0, 0, 1, 1], [], []>} : vector<256x128xbf16>, vector<128x128xbf16>, vector<256x128xf32> -> vector<256x128xf32>
      %101 = arith.addf %90, %100 : vector<256x128xf32>
      %c255_i32 = arith.constant 255 : i32
      %102 = tpu.dynamic_rotate %101 by %c255_i32 dim 0 : vector<256x128xf32>, i32 -> vector<256x128xf32>
      %103 = arith.addf %69, %102 : vector<256x128xf32>
      %104 = vector.broadcast %1 : vector<1x128xf32> to vector<256x128xf32>
      %105 = arith.addf %103, %104 : vector<256x128xf32>
      %cst_65 = arith.constant 0.000000e+00 : f32
      %106 = vector.broadcast %cst_65 : f32 to vector<256x128xf32>
      %107 = arith.maximumf %105, %106 : vector<256x128xf32>
      %108 = vector.shape_cast %107 : vector<256x128xf32> to vector<8x32x128xf32>
      %109 = vector.extract_strided_slice %108 {offsets = [0, 8, 0], sizes = [8, 16, 128], strides = [1, 1, 1]} : vector<8x32x128xf32> to vector<8x16x128xf32>
      %c0_66 = arith.constant 0 : index
      %110 = arith.index_cast %3 : i32 to index
      %c0_67 = arith.constant 0 : index
      %c0_68 = arith.constant 0 : index
      %111 = vector.load %arg6[%c0_66, %110, %c0_67, %c0_68] : memref<1x16x16x128xf32, #tpu.memory_space<vmem>>, vector<1x8x16x128xf32>
      %112 = vector.shape_cast %111 : vector<1x8x16x128xf32> to vector<8x16x128xf32>
      %113 = vector.shape_cast %109 : vector<8x16x128xf32> to vector<1x8x16x128xf32>
      tpu.vector_store %arg6[%c0_66, %110, %c0_67, %c0_68], %113 {strides = array<i32>} : memref<1x16x16x128xf32, #tpu.memory_space<vmem>>, vector<1x8x16x128xf32>,
    }
    %c2_i32_1 = arith.constant 2 : i32
    return
  }
  func.func @transform_0(%arg0: i32, %arg1: i32, %arg2: i32) -> (i32, i32, i32) {
    %c0_i32 = arith.constant 0 : i32
    %c0_i32_0 = arith.constant 0 : i32
    %c0_i32_1 = arith.constant 0 : i32
    return %arg0, %c0_i32, %c0_i32_0 : i32, i32, i32
  }
  func.func @transform_1(%arg0: i32, %arg1: i32, %arg2: i32) -> (i32, i32, i32) {
    %c0_i32 = arith.constant 0 : i32
    %c0_i32_0 = arith.constant 0 : i32
    %c0_i32_1 = arith.constant 0 : i32
    return %c0_i32, %c0_i32_0, %arg1 : i32, i32, i32
  }
  func.func @transform_2(%arg0: i32, %arg1: i32, %arg2: i32) -> (i32, i32) {
    %c0_i32 = arith.constant 0 : i32
    %c0_i32_0 = arith.constant 0 : i32
    return %c0_i32, %arg1 : i32, i32
  }
  func.func @transform_3(%arg0: i32, %arg1: i32, %arg2: i32) -> (i32, i32, i32, i32) {
    %c0_i32 = arith.constant 0 : i32
    %c0_i32_0 = arith.constant 0 : i32
    return %arg0, %arg2, %c0_i32, %arg1 : i32, i32, i32, i32
  }
}

</mosaic_0001>

<bundles_post_ra>
// kernel: tpu_custom_call.1
= control target key start
LH: loop header
LB: loop body
LE: loop exit
PB: predicated region body
PF: predicated region fallthrough
CT: control target
= control target key end

     0   :  { %6 = vsyncpa [#allocation3], 0  ;;  %s481_s0 = inlined_call_operand.hbm [shape: f32[16,128], index: 0, kind: input, shape index: {}]   ;;  %s482_s1 = inlined_call_operand.hbm [shape: f32[16,128], index: 1, kind: output, shape index: {}]  }
   0x1   :  { %7 = vsyncpa [#allocation4], 0 }
   0x2   :  { %9 = vsyncpa [#allocation4 + $0x1], 0  ;;  %s353_s6 = smov 0   ;;  %s355_s7 = smov 0  }
   0x3   :  { %s357_s8 = smov 0   ;;  %s359_s9 = smov 0  }
   0x4 LB: > { %s374_s10 = sadd.s32 4294967295, %s339_s9   ;;  %s192_s11 = sadd.s32 4294967294, %s339_s9   ;;  %s339_s9 = sphi %s359_s9, %s499_s9   ;;  %s335_s8 = sphi %s357_s8, %s498_s8   ;;  %s331_s7 = sphi %s355_s7, %s497_s7   ;;  %s327_s6 = sphi %s353_s6, %s496_s6  }
   0x5   : > { %s378_s12 = sadd.s32 1, %s339_s9   ;;  %s22_s13 = sadd.s32 1, %s335_s8 }
   0x6   : > { %s19_s14 = ssub.s32 %s339_s9, %s378_s12  ;;  %p35_p0 = scmp.ne.s32.totalorder %s331_s7, %s327_s6 }
   0x7   : > { %p20_p1 = scmp.eq.s32.totalorder %s19_s14, 0  ;;  %p36_p2 = scmp.eq.s32.totalorder %s374_s10, 0 }
   0x8   : > { %p58_p3 = scmp.ne.s32.totalorder %s335_s8, %s331_s7  ;;  %p59_p4 = scmp.eq.s32.totalorder %s374_s10, 1 }
   0x9   : > { %s390_s15 = scalar_select %p20_p1, %s335_s8, %s22_s13  }
   0xa   : > { %p392_p5 = por %p59_p4, %p58_p3  ;;  %p65_p6 = scmp.eq.s32.totalorder %s192_s11, 1 }
   0xb   : > { %p193_p7 = scmp.ge.s32.totalorder %s339_s9, 1  ;;  %p397_p8 = por %p36_p2, %p35_p0 }
   0xc   : > { %s487_s16 = scalar_select %p392_p5, 1, 0 }
   0xd   : > { %s488_s17 = scalar_select %p397_p8, 1, 0 }
   0xe   : > { %p72_p9 = scmp.lt.s32.totalorder %s339_s9, 3  ;;  %p402_p10 = por %p65_p6, %p35_p0 }
   0xf   : > { %s194_s19 = sshll.u32 %s374_s10, 7  ;;  %s341_s21 = smov [#allocation2]  }
  0x10   : > { %s489_s18 = scalar_select %p402_p10, 1, 0 }
  0x11   : > { %p407_p11 = pnand %p193_p7, %p72_p9  ;;  %s87_s22 = sshll.u32 %s341_s21, 4  ;;  %s88_s22 = int_to_ptr.vmem [resolvable:$true] %s87_s22 }
  0x12   : > { %s85_s25 = scalar_lea.hbm %s481_s0, %s194_s19  ;;  %s252_s30 = scalar_lea.hbm %s481_s0, 256 }
  0x13   : > { %s490_s20 = scalar_select %p407_p11, 1, 0 }
  0x14   : > { %p205_p12 = pneg %p407_p11  ;;  %s247_s27 = scalar_lea.hbm %s85_s25, 128 }
  0x15   : > { %p248_p0 = scmp.ne.s32.totalorder %s85_s25, %s247_s27  ;;  %p253_p4 = scmp.lt.s32.totalorder %s85_s25, %s481_s0 }
  0x16   : > { %p420_p13 = pnand %p205_p12, %p397_p8  ;;  %p254_p6 = scmp.lt.s32.totalorder %s252_s30, %s247_s27 }
  0x18   : > { %p249_p1 = pneg %p420_p13  ;;  %p255_p7 = por %p254_p6, %p253_p4 }
  0x1a   : > { %p250_p2 = pnand %p249_p1, %p248_p0 }
  0x1c   : > { %p251_p3 = pneg %p250_p2 }
  0x1e   : > { %p256_p9 = pnand %p255_p7, %p251_p3 }
  0x20   : > { %259 = shalt.err (!%p256_p9)
}
  0x21   : > { %s260_s4 = scalar_lea.vmem %s88_s22, 128  ;;  %p268_p8 = scmp.lt.s32.totalorder %s88_s22, %s88_s22 }
  0x22   : > { %p261_p12 = scmp.ne.s32.totalorder %s88_s22, %s260_s4  ;;  %p269_p11 = scmp.lt.s32.totalorder %s260_s4, %s260_s4 }
  0x24   : > { %p263_p10 = pnand %p261_p12, %p249_p1  ;;  %p270_p0 = por %p269_p11, %p268_p8 }
  0x26   : > { %p264_p5 = pneg %p263_p10 }
  0x28   : > { %p271_p2 = pnand %p270_p0, %p264_p5 }
  0x2a   : > { %274 = shalt.err (!%p271_p2)
}
  0x2b   : > { %208 = dma.hbm_to_vmem [thread:$0]  (!%p420_p13), %s85_s25, 128, %s88_s22, [#allocation3]  }
  0x2c   : > { %p492_p4 = scmp.ne.s32.totalorder %s490_s20, 0 }
  0x2d   : > { %p493_p6 = scmp.ne.s32.totalorder (!%p492_p4), %s488_s17, 0 }
  0x2e   : > { %100 = sbr.rel (%p492_p4) target bundleno = 77 (0x4d), region = 24 }
  0x33   : > { %318 = dma.done.wait (%p493_p6), [#allocation3], 128  }
  0x34   : > { %320 = vsyncadd (%p493_p6), [#allocation3], 4294967168  ;;  %s112_s5 = sand.u32 1, %s331_s7   ;;  %s446_s22 = scalar_lea.hbm %s482_s1, %s194_s19  ;;  %v115_v0 = vld [vmem:[#allocation2] sm:$0xff] }
  0x35   : > { %s196_s11 = sshll.u32 %s112_s5, 3  ;;  %s118_s20 = scalar_lea.sflag [#allocation4], %s112_s5 }
  0x36   : > { %s114_s13 = scalar_lea.vmem [#allocation5], %s196_s11  ;;  %p494_p8 = scmp.ne.s32.totalorder %s487_s16, 0 }
  0x37   : > { %s131_s14 = sshll.u32 %s114_s13, 4  ;;  %116 = vst [vmem:[%s114_s13] sm:$0xff] %v115_v0  ;;  %s342_s17 = smov [#allocation5]   ;;  %s132_s14 = int_to_ptr.vmem [resolvable:$true] %s131_s14 }
  0x38   : > { %s275_s24 = scalar_lea.vmem %s132_s14, 128  ;;  %s279_s25 = sshll.u32 %s342_s17, 4  ;;  %s280_s25 = int_to_ptr.vmem [resolvable:$false] %s279_s25 }
  0x39   : > { %p276_p5 = scmp.ne.s32.totalorder %s132_s14, %s275_s24  ;;  %s281_s26 = scalar_lea.vmem %s280_s25, 256 }
  0x3a   : > { %p282_p13 = scmp.lt.s32.totalorder %s132_s14, %s280_s25  ;;  %p283_p1 = scmp.lt.s32.totalorder %s281_s26, %s275_s24 }
  0x3b   : > { %p277_p10 = pnand %p276_p5, %p494_p8 }
  0x3c   : > { %p284_p3 = por %p283_p1, %p282_p13 }
  0x3d   : > { %p278_p11 = pneg %p277_p10 }
  0x3f   : > { %p285_p7 = pnand %p284_p3, %p278_p11 }
  0x41   : > { %288 = shalt.err (!%p285_p7)
}
  0x42   : > { %s289_s10 = scalar_lea.hbm %s446_s22, 128  ;;  %s293_s28 = scalar_lea.hbm %s482_s1, 256 }
  0x43   : > { %p290_p9 = scmp.ne.s32.totalorder %s446_s22, %s289_s10  ;;  %p294_p2 = scmp.lt.s32.totalorder %s446_s22, %s482_s1 }
  0x44   : > { %p295_p4 = scmp.lt.s32.totalorder %s293_s28, %s289_s10 }
  0x45   : > { %p291_p12 = pnand %p290_p9, %p494_p8 }
  0x46   : > { %p296_p6 = por %p295_p4, %p294_p2 }
  0x47   : > { %p292_p0 = pneg %p291_p12 }
  0x49   : > { %p297_p5 = pnand %p296_p6, %p292_p0 }
  0x4b   : > { %300 = shalt.err (!%p297_p5)
}
  0x4c   : > { %203 = dma.vmem_to_hbm [thread:$0]  (%p494_p8), %s132_s14, 128, %s446_s22, %s118_s20  }
  0x4d PF: > { %p213_p10 = scmp.ge.s32.totalorder %s339_s9, 2  ;;  %s143_s2 = sand.u32 1, %s327_s6  }
  0x4e   : > { %p495_p11 = scmp.ne.s32.totalorder %s489_s18, 0  ;;  %s144_s3 = scalar_lea.sflag [#allocation4], %s143_s2 }
  0x50   : > { %p210_p13 = pnand %p213_p10, %p495_p11 }
  0x52   : > { %p211_p1 = pneg %p210_p13 }
  0x54   : > { %322 = dma.done.wait (%p211_p1), %s144_s3, 128  }
  0x55   : > { %324 = vsyncadd (%p211_p1), %s144_s3, 4294967168  ;;  %p12_p3 = scmp.ge.s32.totalorder %s378_s12, 4   ;;  %s496_s6 = smov %s331_s7 }
  0x56   : > { %s497_s7 = smov %s335_s8  ;;  %s498_s8 = smov %s390_s15 }
  0x57   : > { %s499_s9 = smov %s378_s12  ;;  %14 = sbr.rel (!%p12_p3) target bundleno = 4 (0x4), region = 62 }
  0x5c   :  { %149 = vsyncpa [#allocation3], 1 }
  0x5d   :  { %151 = vsyncpa [#allocation3 + $0x1], 1 }
  0x5e   :  { %152 = vsyncpa [#allocation4], 1 }
  0x5f   :  { %154 = vsyncpa [#allocation4 + $0x1], 1 }

// kernel: tpu_custom_call.1
= control target key start
LH: loop header
LB: loop body
LE: loop exit
PB: predicated region body
PF: predicated region fallthrough
CT: control target
= control target key end

     0   :  { %6 = vsyncpa [#allocation3], 0  ;;  %s103_s0 = inlined_call_operand.hbm [shape: f32[8,128], index: 0, kind: input, shape index: {}]   ;;  %s104_s1 = inlined_call_operand.hbm [shape: f32[8,128], index: 1, kind: output, shape index: {}]  }
   0x1   :  { %7 = vsyncpa [#allocation4], 0  ;;  %s85_s6 = smov [#allocation2]  }
   0x2   :  { %s14_s7 = sshll.u32 %s85_s6, 4  ;;  %s15_s7 = int_to_ptr.vmem [resolvable:$true] %s14_s7 }
   0x3   :  { %s49_s8 = scalar_lea.vmem %s15_s7, 128  ;;  %p54_p1 = scmp.lt.s32.totalorder %s15_s7, %s15_s7 }
   0x4   :  { %p50_p0 = scmp.ne.s32.totalorder %s15_s7, %s49_s8  ;;  %p55_p2 = scmp.lt.s32.totalorder %s49_s8, %s49_s8 }
   0x6   :  { %p56_p3 = por %p55_p2, %p54_p1 }
   0x8   :  { %p57_p4 = pnand %p56_p3, %p50_p0 }
   0xa   :  { %60 = shalt.err (!%p57_p4)
}
   0xb   :  { %17 = dma.hbm_to_vmem [thread:$0]  %s103_s0, 128, %s15_s7, [#allocation3]  }
   0xc   :  { %81 = dma.done.wait [#allocation3], 128  }
   0xd   :  { %82 = vsyncadd [#allocation3], 4294967168  ;;  %s86_s11 = smov [#allocation5]   ;;  %v21_v0 = vld [vmem:[#allocation2] sm:$0xff] }
   0xe   :  { %s30_s12 = sshll.u32 %s86_s11, 4  ;;  %v22_v1 = vrot.slane %v21_v0, 7  ;;  %s31_s12 = int_to_ptr.vmem [resolvable:$true] %s30_s12 }
   0xf   :  { %s61_s13 = scalar_lea.vmem %s31_s12, 128  ;;  %p66_p6 = scmp.lt.s32.totalorder %s31_s12, %s31_s12 }
  0x10   :  { %23 = vst [vmem:[#allocation5] sm:$0xff] %v22_v1  ;;  %p62_p5 = scmp.ne.s32.totalorder %s31_s12, %s61_s13  ;;  %p67_p7 = scmp.lt.s32.totalorder %s61_s13, %s61_s13 }
  0x12   :  { %p68_p8 = por %p67_p7, %p66_p6 }
  0x14   :  { %p69_p9 = pnand %p68_p8, %p62_p5 }
  0x16   :  { %72 = shalt.err (!%p69_p9)
}
  0x17   :  { %33 = dma.vmem_to_hbm [thread:$0]  %s31_s12, 128, %s104_s1, [#allocation4]  }
  0x18   :  { %83 = dma.done.wait [#allocation4], 128  }
  0x19   :  { %84 = vsyncadd [#allocation4], 4294967168 }
  0x1a   :  { %37 = vsyncpa [#allocation3], 1 }
  0x1b   :  { %38 = vsyncpa [#allocation4], 1 }

// kernel: tpu_custom_call.1
= control target key start
LH: loop header
LB: loop body
LE: loop exit
PB: predicated region body
PF: predicated region fallthrough
CT: control target
= control target key end

     0   :  { %8 = vsyncpa [#allocation3], 0  ;;  %s5063_s0 = inlined_call_operand.hbm [shape: bf16[2,576,128], index: 0, kind: input, shape index: {}]   ;;  %s5064_s1 = inlined_call_operand.hbm [shape: bf16[9,128,128], index: 1, kind: input, shape index: {}]   ;;  %s5065_s2 = inlined_call_operand.vmem [shape: f32[1,128], index: 2, kind: input, shape index: {}]   ;;  %s5066_s3 = inlined_call_operand.hbm [shape: f32[2,16,16,128], index: 3, kind: output, shape index: {}]  }
   0x1   :  { %10 = vsyncpa [#allocation3 + $0x1], 0 }
   0x2   :  { %11 = vsyncpa [#allocation6], 0 }
   0x3   :  { %12 = vsyncpa [#allocation4], 0 }
   0x4   :  { %14 = vsyncpa [#allocation4 + $0x1], 0  ;;  %s4180_s12 = smov 0   ;;  %s4182_s13 = smov 0  }
   0x5   :  { %s4184_s14 = smov 0   ;;  %s4186_s15 = smov 0  }
   0x6   :  { %s4188_s16 = smov 0   ;;  %s4190_s17 = smov 0  }
   0x7 LB: > { %s2977_s18 = sadd.s32 4294967295, %s4147_s17   ;;  %s2978_s19 = sadd.s32 4294967294, %s4147_s17   ;;  %s4147_s17 = sphi %s4190_s17, %s20_s17   ;;  %s4143_s16 = sphi %s4188_s16, %s5097_s16   ;;  %s4139_s15 = sphi %s4186_s15, %s5096_s15   ;;  %s4135_s14 = sphi %s4184_s14, %s5095_s14   ;;  %s4131_s13 = sphi %s4182_s13, %s5094_s13   ;;  %s4127_s12 = sphi %s4180_s12, %s5093_s12  }
   0x8   : > { %p59_p0 = scmp.ne.s32.totalorder %s4131_s13, %s4127_s12  ;;  %p4214_p1 = scmp.eq.s32.totalorder %s2977_s18, 0 }
   0x9   : > { %p4218_p2 = scmp.eq.s32.totalorder %s2977_s18, 1  ;;  %p145_p3 = scmp.eq.s32.totalorder %s2978_s19, 1 }
   0xa   : > { %p4224_p4 = por %p4214_p1, %p59_p0  ;;  %p2979_p5 = scmp.ge.s32.totalorder %s4147_s17, 1 }
   0xb   : > { %p4229_p6 = por %p145_p3, %p59_p0  ;;  %p152_p7 = scmp.lt.s32.totalorder %s4147_s17, 3 }
   0xc   : > { %s5073_s22 = scalar_select %p4224_p4, 1, 0 }
   0xd   : > { %s5074_s23 = scalar_select %p4229_p6, 1, 0 }
   0xe   : > { %p4234_p8 = pnand %p2979_p5, %p152_p7  ;;  %s4153_s25 = smov [#allocation5]  }
   0xf   : > { %s166_s26 = sshll.u32 %s4153_s25, 4  ;;  %p2982_p10 = scmp.ge.s32.totalorder %s4147_s17, 2  ;;  %s167_s26 = int_to_ptr.vmem [resolvable:$true] %s166_s26 }
  0x10   : > { %p3805_p9 = pneg %p4234_p8  ;;  %s39_s28 = sadd.s32 1, %s4143_s16 }
  0x11   : > { %s4016_s29 = scalar_lea.vmem %s167_s26, 9216  ;;  %p4024_p5 = scmp.lt.s32.totalorder %s167_s26, %s167_s26 }
  0x12   : > { %p4243_p11 = pnand %p3805_p9, %p4214_p1  ;;  %p4017_p13 = scmp.ne.s32.totalorder %s167_s26, %s4016_s29 }
  0x13   : > { %p4025_p7 = scmp.lt.s32.totalorder %s4016_s29, %s4016_s29 }
  0x14   : > { %p4007_p12 = pneg %p4243_p11 }
  0x15   : > { %p4026_p6 = por %p4025_p7, %p4024_p5 }
  0x16   : > { %p4019_p0 = pnand %p4017_p13, %p4007_p12 }
  0x18   : > { %p4020_p3 = pneg %p4019_p0 }
  0x1a   : > { %p4027_p4 = pnand %p4026_p6, %p4020_p3 }
  0x1c   : > { %4030 = shalt.err (!%p4027_p4)
}
  0x1d   : > { %s4154_s30 = smov 64   ;;  %s4155_s4 = smov 4  }
  0x1e   : > { %3808 = dma.hbm_to_vmem [thread:$0]  (!%p4243_p11), %s5064_s1, 9216, %s167_s26, [#allocation6], %s4154_s30, %s4154_s30, %s4155_s4  }
  0x1f   : > { %p41_p4 = scmp.ge.s32.totalorder %s39_s28, 2  ;;  %s46_s7 = sadd.s32 1, %s4135_s14 }
  0x20   : > { %p53_p6 = scmp.ne.s32.totalorder %s4135_s14, %s4131_s13  ;;  %p54_p9 = scmp.eq.s32.totalorder %s4147_s17, 0 }
  0x21   : > { %s5099_s28 = smov (%p41_p4, %s39_s28), 0  ;;  %p3818_p0 = scmp.lt.s32.totalorder %s4147_s17, 2 }
  0x22   : > { %p55_p12 = por %p54_p9, %p53_p6  ;;  %p4266_p13 = por %p4218_p2, %p53_p6 }
  0x23   : > { %s43_s9 = ssub.s32 %s4143_s16, %s5099_s28  ;;  %s186_s10 = sand.u32 1, %s4135_s14  }
  0x24   : > { %p44_p3 = scmp.eq.s32.totalorder %s43_s9, 0  ;;  %s3794_s11 = smul.u32 288, %s186_s10 }
  0x25   : > { %s3795_s19 = smul.u32 4608, %s4143_s16  ;;  %p4278_p11 = pnand %p3818_p0, %p55_p12 }
  0x26   : > { %s4275_s18 = scalar_select %p44_p3, %s4135_s14, %s46_s7  }
  0x27   : > { %s190_s25 = scalar_lea.vmem [#allocation2], %s3794_s11  ;;  %s196_s5 = scalar_lea.hbm %s5063_s0, %s3795_s19 }
  0x28   : > { %s197_s26 = sshll.u32 %s190_s25, 4  ;;  %s187_s6 = scalar_lea.sflag [#allocation3], %s186_s10  ;;  %s198_s26 = int_to_ptr.vmem [resolvable:$true] %s197_s26 }
  0x29   : > { %p4033_p2 = pneg %p4278_p11  ;;  %s4044_s9 = scalar_lea.vmem %s198_s26, 4608 }
  0x2a   : > { %p4045_p5 = scmp.ne.s32.totalorder %s198_s26, %s4044_s9  ;;  %s4156_s7 = smov [#allocation2]  }
  0x2b   : > { %s4049_s11 = sshll.u32 %s4156_s7, 4  ;;  %s4050_s11 = int_to_ptr.vmem [resolvable:$false] %s4049_s11 }
  0x2c   : > { %p4047_p7 = pnand %p4045_p5, %p4033_p2  ;;  %s4051_s25 = scalar_lea.vmem %s4050_s11, 9216 }
  0x2d   : > { %p4052_p6 = scmp.lt.s32.totalorder %s198_s26, %s4050_s11  ;;  %p4053_p9 = scmp.lt.s32.totalorder %s4051_s25, %s4044_s9 }
  0x2e   : > { %p4048_p4 = pneg %p4047_p7 }
  0x2f   : > { %p4054_p12 = por %p4053_p9, %p4052_p6 }
  0x31   : > { %p4055_p0 = pnand %p4054_p12, %p4048_p4 }
  0x33   : > { %4058 = shalt.err (!%p4055_p0)
}
  0x34   : > { %3812 = dma.hbm_to_vmem [thread:$0]  (!%p4278_p11), %s196_s5, 4608, %s198_s26, %s187_s6, %s4154_s30, %s4154_s30, %s4155_s4  }
  0x35   : > { %209 = sbr.rel (%p4234_p8) target bundleno = 606 (0x25e), region = 32 }
  0x3a   : > { %s4295_s10 = sand.u32 1, %s4131_s13   ;;  %p5079_p3 = scmp.ne.s32.totalorder %s5073_s22, 0 }
  0x3b   : > { %s3796_s19 = smul.u32 288, %s4295_s10  ;;  %s212_s29 = scalar_lea.sflag [#allocation3], %s4295_s10 }
  0x3d   : > { %s4299_s21 = scalar_lea.vmem [#allocation2], %s3796_s19 }
  0x3e   : > { %4114 = dma.done.wait (%p5079_p3), %s212_s29, 4608  }
  0x3f   : > { %4116 = vsyncadd (%p5079_p3), %s212_s29, 4294962688 }
  0x40   : > { %4118 = dma.done.wait (%p4214_p1), [#allocation6], 9216  }
  0x41   : > { %4120 = vsyncadd (%p4214_p1), [#allocation6], 4294958080  ;;  %s2986_s24 = sshll.u32 %s4295_s10, 8  ;;  %v4313_v0 = vld [vmem:[%s5065_s2] ss:$0 sm:$0xff]  ;;  %s4317_s27 = smov 0  }
  0x42   : > { %5080 = vst [vmem:[#allocation11_spill] sm:$0xff] %v4313_v0  ;;  %s4315_s26 = scalar_lea.vmem [#allocation7], %s2986_s24 }
  0x43 LB: >> { %v3882_v1 = vld [vmem:[#allocation5 + $0xf8] sm:$0xff]   ;;  %v3883_v2 = vld [vmem:[#allocation5 + $0xf0] sm:$0xff]   ;;  %s4323_s20 = sshll.u32 %s4151_s27, 8  ;;  %v3884_v3 = vld [vmem:[#allocation5 + $0xe8] sm:$0xff]   ;;  %s3126_s4 = sshll.u32 %s4151_s27, 7  ;;  %s4151_s27 = sphi %s4317_s27, %s257_s27  }
  0x44   : >> { %3346 = vmatprep.subr.bf16.mxu0 %v3882_v1  ;;  %3778 = vmatprep.subr.bf16.mxu1 %v3882_v1  ;;  %s3123_s22 = sadd.s32 32, %s4323_s20  ;;  %v3885_v4 = vld [vmem:[#allocation5 + $0xe0] sm:$0xff]   ;;  %v3886_v7 = vld [vmem:[#allocation5 + $0xd8] sm:$0xff]   ;;  %v3887_v8 = vld [vmem:[#allocation5 + $0xd0] sm:$0xff]   ;;  %s3125_s7 = sadd.s32 64, %s4323_s20 }
  0x45   : >> { %3347 = vmatpush3.bf16.msra.mxu0 %v3882_v1  ;;  %3786 = vmatpush3.bf16.msra.mxu1 %v3882_v1  ;;  %s315_s5 = sshra.s32 %s3123_s22, 3  ;;  %v3888_v9 = vld [vmem:[#allocation5 + $0xc8] sm:$0xff]   ;;  %v3889_v10 = vld [vmem:[#allocation5 + $0xc0] sm:$0xff]   ;;  %v3894_v11 = vld [vmem:[#allocation5 + $0x38] sm:$0xff]   ;;  %s261_s11 = sshra.s32 %s4323_s20, 3 }
  0x46   : >> { %3348 = vmatprep.subr.bf16.mxu0 %v3883_v2  ;;  %3779 = vmatprep.subr.bf16.mxu1 %v3883_v2  ;;  %s2991_s6 = sshll.u32 %s315_s5, 2  ;;  %v3895_v13 = vld [vmem:[#allocation5 + $0x1b8] sm:$0xff]   ;;  %v3896_v15 = vld [vmem:[#allocation5 + $0x30] sm:$0xff]   ;;  %s964_s25 = sshra.s32 %s3125_s7, 3  ;;  %v3902_v19 = vld [vmem:[#allocation5 + $0x28] sm:$0xff]  }
  0x47   : >> { %s4327_s9 = scalar_lea.vmem %s4299_s21, %s2991_s6 [#allocation2]  ;;  %v3897_v16 = vld [vmem:[#allocation5 + $0x1b0] sm:$0xff]   ;;  %v3903_v21 = vld [vmem:[#allocation5 + $0x1a8] sm:$0xff]   ;;  %s2989_s19 = sshll.u32 %s261_s11, 2  ;;  %v3904_v23 = vld [vmem:[#allocation5 + $0x20] sm:$0xff]  }
  0x48   : >> { %v4330_v5 = vld [vmem:[%s4327_s9] sm:$0xff]   ;;  %v4338_v12 = vld [vmem:[%s4327_s9 + $0x8] sm:$0xff]   ;;  %v4345_v17 = vld [vmem:[%s4327_s9 + $0x10] sm:$0xff]   ;;  %s3041_s29 = sshll.u32 %s964_s25, 2  ;;  %s4362_s24 = scalar_lea.vmem %s4299_s21, %s2989_s19 [#allocation2] }
  0x49   : >> { %3349 = vmatpush3.bf16.msra.mxu0 %v3883_v2  ;;  %3787 = vmatpush3.bf16.msra.mxu1 %v3883_v2  ;;  %v4333_v6 = vld [vmem:[%s4327_s9 + $0x40] sm:$0xff]   ;;  %v4341_v14 = vld [vmem:[%s4327_s9 + $0x48] sm:$0xff]   ;;  %v4348_v18 = vld [vmem:[%s4327_s9 + $0x50] sm:$0xff]   ;;  %s4368_s30 = scalar_lea.vmem %s4299_s21, %s3041_s29 [#allocation2]  ;;  %s4911_s20 = scalar_lea.vmem %s4315_s26, %s3126_s4 [#allocation7] }
  0x4a   : >> { %3350 = vmatprep.subr.bf16.mxu0 %v3884_v3  ;;  %3780 = vmatprep.subr.bf16.mxu1 %v3884_v3  ;;  %v4354_v20 = vld [vmem:[%s4327_s9 + $0x18] sm:$0xff]   ;;  %v3905_v24 = vld [vmem:[#allocation5 + $0x1a0] sm:$0xff]   ;;  %v4376_v28 = vld [vmem:[%s4327_s9 + $0x28] sm:$0xff]   ;;  %s257_s27 = sadd.s32 1, %s4151_s27  }
  0x4b   : >> { %3362 = vmatprep.mubr.bf16.mxu0 %v4330_v5  ;;  %3378 = vmatprep.mubr.bf16.mxu1 %v4333_v6  ;;  %v4359_v22 = vld [vmem:[%s4327_s9 + $0x58] sm:$0xff]   ;;  %v4365_v25 = vld [vmem:[%s4327_s9 + $0x20] sm:$0xff]   ;;  %v4381_v30 = vld [vmem:[%s4327_s9 + $0x68] sm:$0xff]   ;;  %p254_p1 = scmp.ge.s32.totalorder %s257_s27, 2  }
  0x4c   : >> { %v4371_v26 = vld [vmem:[%s4327_s9 + $0x60] sm:$0xff]   ;;  %v3910_v27 = vld [vmem:[#allocation5 + $0x18] sm:$0xff]   ;;  %v3912_v31 = vld [vmem:[#allocation5 + $0x10] sm:$0xff]   ;;  %s3127_s22 = sshll.u32 (%p254_p1), %s4139_s15, 12  ;;  %s2852_s7 = sshll.u32 (%p254_p1), %s4315_s26, 4  ;;  %s5015_s7 = int_to_ptr.vmem [resolvable:$true] %s2852_s7 }
  0x4d   : >> { %3351 = vmatpush3.bf16.msra.mxu0 %v3884_v3  ;;  %3788 = vmatpush3.bf16.msra.mxu1 %v3884_v3  ;;  %v3911_v29 = vld [vmem:[#allocation5 + $0x198] sm:$0xff]   ;;  %v3913_v32 = vld [vmem:[#allocation5 + $0x190] sm:$0xff]   ;;  %v3918_v35 = vld [vmem:[#allocation5 + $0x8] sm:$0xff]   ;;  %s2835_s11 = scalar_lea.sflag (%p254_p1), [#allocation4], %s4295_s10  ;;  %s4059_s25 = scalar_lea.vmem (%p254_p1), %s5015_s7, 4096 }
  0x4e   : >> { %3352 = vmatprep.subr.bf16.mxu0 %v3885_v4  ;;  %3781 = vmatprep.subr.bf16.mxu1 %v3885_v4  ;;  %v4384_v33 = vld [vmem:[%s4327_s9 + $0x30] sm:$0xff]   ;;  %v4392_v36 = vld [vmem:[%s4327_s9 + $0x38] sm:$0xff]   ;;  %v3919_v37 = vld [vmem:[#allocation5 + $0x188] sm:$0xff]   ;;  %p4060_p8 = scmp.ne.s32.totalorder (%p254_p1), %s5015_s7, %s4059_s25  ;;  %s4157_s21 = smov (%p254_p1), [#allocation7]  }
  0x4f   : >> { %v4387_v34 = vld [vmem:[%s4327_s9 + $0x70] sm:$0xff]   ;;  %v4397_v38 = vld [vmem:[%s4327_s9 + $0x78] sm:$0xff]   ;;  %v3920_v39 = vld [vmem:[#allocation5] sm:$0xff]   ;;  %s4063_s27 = sshll.u32 (%p254_p1), %s4157_s21, 4  ;;  %s4064_s27 = int_to_ptr.vmem [resolvable:$false] %s4063_s27 }
  0x50   : >> { %v3921_v40 = vld [vmem:[#allocation5 + $0x180] sm:$0xff]   ;;  %v3926_v43 = vld [vmem:[#allocation5 + $0x138] sm:$0xff]   ;;  %v4408_v44 = vld [vmem:[%s4362_s24 + $0x8] sm:$0xff]   ;;  %p4061_p11 = pnand (%p254_p1), %p4060_p8, %p4266_p13  ;;  %s4065_s15 = scalar_lea.vmem (%p254_p1), %s4064_s27, 8192 }
  0x51   : >> { %3353 = vmatpush3.bf16.msra.mxu0 %v3885_v4  ;;  %3789 = vmatpush3.bf16.msra.mxu1 %v3885_v4  ;;  %v4400_v41 = vld [vmem:[%s4362_s24] sm:$0xff]   ;;  %v3927_v45 = vld [vmem:[#allocation5 + $0x78] sm:$0xff]   ;;  %v4413_v46 = vld [vmem:[%s4368_s30 + $0x8] sm:$0xff]   ;;  %p4066_p5 = scmp.lt.s32.totalorder (%p254_p1), %s5015_s7, %s4064_s27  ;;  %p4067_p7 = scmp.lt.s32.totalorder (%p254_p1), %s4065_s15, %s4059_s25 }
  0x52   : >> { %3354 = vmatprep.subr.bf16.mxu0 %v3886_v7  ;;  %3782 = vmatprep.subr.bf16.mxu1 %v3886_v7  ;;  %v4403_v42 = vld [vmem:[%s4368_s30] sm:$0xff]   ;;  %v4416_v47 = vld [vmem:[%s4362_s24 + $0x10] sm:$0xff]   ;;  %v3938_v51 = vld [vmem:[#allocation5 + $0x128] sm:$0xff]   ;;  %p4062_p2 = pneg (%p254_p1), %p4061_p11 }
  0x53   : >> { %v4419_v48 = vld [vmem:[%s4368_s30 + $0x10] sm:$0xff]   ;;  %v4426_v52 = vld [vmem:[%s4362_s24 + $0x18] sm:$0xff]   ;;  %v3939_v53 = vld [vmem:[#allocation5 + $0x68] sm:$0xff]   ;;  %p4068_p4 = por (%p254_p1), %p4067_p7, %p4066_p5 }
  0x54   : >> { %v3932_v49 = vld [vmem:[#allocation5 + $0x130] sm:$0xff]   ;;  %v4429_v54 = vld [vmem:[%s4368_s30 + $0x18] sm:$0xff]   ;;  %v4432_v55 = vld [vmem:[%s4362_s24 + $0x20] sm:$0xff]  }
  0x55   : >> { %3355 = vmatpush3.bf16.msra.mxu0 %v3886_v7  ;;  %3790 = vmatpush3.bf16.msra.mxu1 %v3886_v7  ;;  %v3933_v50 = vld [vmem:[#allocation5 + $0x70] sm:$0xff]   ;;  %v4435_v56 = vld [vmem:[%s4368_s30 + $0x20] sm:$0xff]   ;;  %v4442_v59 = vld [vmem:[%s4362_s24 + $0x28] sm:$0xff]   ;;  %p4069_p6 = pnand (%p254_p1), %p4068_p4, %p4062_p2 }
  0x56   : >> { %3356 = vmatprep.subr.bf16.mxu0 %v3887_v8  ;;  %3783 = vmatprep.subr.bf16.mxu1 %v3887_v8  ;;  %v3944_v57 = vld [vmem:[#allocation5 + $0x120] sm:$0xff]   ;;  %v4445_v60 = vld [vmem:[%s4368_s30 + $0x28] sm:$0xff]   ;;  %v3950_v61 = vld [vmem:[#allocation5 + $0x118] sm:$0xff]  }
  0x57   : >> { %v3945_v58 = vld [vmem:[#allocation5 + $0x60] sm:$0xff]   ;;  %v3951_v62 = vld [vmem:[#allocation5 + $0x58] sm:$0xff]   ;;  %v4448_v63 = vld [vmem:[%s4362_s24 + $0x30] sm:$0xff]  }
  0x58   : >> { %v4451_v1 = vld [vmem:[%s4368_s30 + $0x30] sm:$0xff]   ;;  %v4458_v4 = vld [vmem:[%s4362_s24 + $0x38] sm:$0xff]  }
  0x59   : >> { %3357 = vmatpush3.bf16.msra.mxu0 %v3887_v8  ;;  %3791 = vmatpush3.bf16.msra.mxu1 %v3887_v8  ;;  %v3956_v2 = vld [vmem:[#allocation5 + $0x110] sm:$0xff]   ;;  %v4461_v7 = vld [vmem:[%s4368_s30 + $0x38] sm:$0xff]   ;;  %v3962_v8 = vld [vmem:[#allocation5 + $0x108] sm:$0xff]  }
  0x5a   : >> { %3358 = vmatprep.subr.bf16.mxu0 %v3888_v9  ;;  %3784 = vmatprep.subr.bf16.mxu1 %v3888_v9  ;;  %v3957_v3 = vld [vmem:[#allocation5 + $0x50] sm:$0xff]  }
  0x5d   : >> { %3359 = vmatpush3.bf16.msra.mxu0 %v3888_v9  ;;  %3792 = vmatpush3.bf16.msra.mxu1 %v3888_v9  ;;  %v3963_v9 = vld [vmem:[#allocation5 + $0x48] sm:$0xff]  }
  0x5e   : >> { %3360 = vmatprep.subr.bf16.mxu0 %v3889_v10  ;;  %3785 = vmatprep.subr.bf16.mxu1 %v3889_v10 }
  0x61   : >> { %3361 = vmatpush3.bf16.msra.mxu0 %v3889_v10  ;;  %3793 = vmatpush3.bf16.msra.mxu1 %v3889_v10  ;;  %v4464_v10 = vld [vmem:[%s4362_s24 + $0x40] sm:$0xff]  }
  0x62   : >> { %3394 = vmatprep.subr.bf16.mxu1 %v3894_v11  ;;  %3442 = vmatprep.subr.bf16.mxu0 %v3895_v13 }
  0x64   : >> { %3363 = vmatmul.mubr.bf16.vlgmr.msra.gmra.mxu0 %v4338_v12  ;;  %3379 = vmatmul.mubr.bf16.vlgmr.msra.gmra.mxu1 %v4341_v14 }
  0x65   : >> { %3395 = vmatpush3.bf16.msra.mxu1 %v3894_v11  ;;  %3443 = vmatpush3.bf16.msra.mxu0 %v3895_v13  ;;  %v4467_v11 = vld [vmem:[%s4368_s30 + $0x40] sm:$0xff]  }
  0x66   : >> { %3396 = vmatprep.subr.bf16.mxu1 %v3896_v15  ;;  %3444 = vmatprep.subr.bf16.mxu0 %v3897_v16  ;;  %v3968_v13 = vld [vmem:[#allocation5 + $0x100] sm:$0xff]  }
  0x67   : >> { %3366 = vmatprep.mubr.bf16.mxu0 %v4345_v17  ;;  %3382 = vmatprep.mubr.bf16.mxu1 %v4348_v18 }
  0x69   : >> { %3397 = vmatpush3.bf16.msra.mxu1 %v3896_v15  ;;  %3445 = vmatpush3.bf16.msra.mxu0 %v3897_v16  ;;  %v3969_v15 = vld [vmem:[#allocation5 + $0x40] sm:$0xff]   ;;  %v4474_v16 = vld [vmem:[%s4362_s24 + $0x48] sm:$0xff]  }
  0x6a   : >> { %3398 = vmatprep.subr.bf16.mxu1 %v3902_v19  ;;  %3446 = vmatprep.subr.bf16.mxu0 %v3903_v21 }
  0x6c   : >> { %3367 = vmatmul.mubr.bf16.gmra.mxu0 %v4354_v20  ;;  %3383 = vmatmul.mubr.bf16.gmra.mxu1 %v4359_v22 }
  0x6d   : >> { %3399 = vmatpush3.bf16.msra.mxu1 %v3902_v19  ;;  %3447 = vmatpush3.bf16.msra.mxu0 %v3903_v21  ;;  %v4477_v19 = vld [vmem:[%s4368_s30 + $0x48] sm:$0xff]   ;;  %v3970_v21 = vld [vmem:[#allocation5 + $0x1f8] sm:$0xff]  }
  0x6e   : >> { %3400 = vmatprep.subr.bf16.mxu1 %v3904_v23  ;;  %3448 = vmatprep.subr.bf16.mxu0 %v3905_v24 }
  0x6f   : >> { %3370 = vmatprep.mubr.bf16.mxu0 %v4365_v25  ;;  %3386 = vmatprep.mubr.bf16.mxu1 %v4371_v26 }
  0x71   : >> { %3401 = vmatpush3.bf16.msra.mxu1 %v3904_v23  ;;  %3449 = vmatpush3.bf16.msra.mxu0 %v3905_v24  ;;  %v3971_v23 = vld [vmem:[#allocation5 + $0x178] sm:$0xff]   ;;  %v4480_v24 = vld [vmem:[%s4362_s24 + $0x50] sm:$0xff]  }
  0x72   : >> { %3402 = vmatprep.subr.bf16.mxu1 %v3910_v27  ;;  %3450 = vmatprep.subr.bf16.mxu0 %v3911_v29 }
  0x74   : >> { %3371 = vmatmul.mubr.bf16.gmra.mxu0 %v4376_v28  ;;  %3387 = vmatmul.mubr.bf16.gmra.mxu1 %v4381_v30 }
  0x75   : >> { %3403 = vmatpush3.bf16.msra.mxu1 %v3910_v27  ;;  %3451 = vmatpush3.bf16.msra.mxu0 %v3911_v29  ;;  %v4483_v27 = vld [vmem:[%s4368_s30 + $0x50] sm:$0xff]   ;;  %v4490_v29 = vld [vmem:[%s4362_s24 + $0x58] sm:$0xff]  }
  0x76   : >> { %3404 = vmatprep.subr.bf16.mxu1 %v3912_v31  ;;  %3452 = vmatprep.subr.bf16.mxu0 %v3913_v32 }
  0x77   : >> { %3374 = vmatprep.mubr.bf16.mxu0 %v4384_v33  ;;  %3390 = vmatprep.mubr.bf16.mxu1 %v4387_v34 }
  0x79   : >> { %3405 = vmatpush3.bf16.msra.mxu1 %v3912_v31  ;;  %3453 = vmatpush3.bf16.msra.mxu0 %v3913_v32  ;;  %v4493_v31 = vld [vmem:[%s4368_s30 + $0x58] sm:$0xff]   ;;  %v4496_v32 = vld [vmem:[%s4362_s24 + $0x60] sm:$0xff]  }
  0x7a   : >> { %3406 = vmatprep.subr.bf16.mxu1 %v3918_v35  ;;  %3454 = vmatprep.subr.bf16.mxu0 %v3919_v37 }
  0x7c   : >> { %3375 = vmatmul.mubr.bf16.gmra.mxu0 %v4392_v36  ;;  %3391 = vmatmul.mubr.bf16.gmra.mxu1 %v4397_v38 }
  0x7d   : >> { %3407 = vmatpush3.bf16.msra.mxu1 %v3918_v35  ;;  %3455 = vmatpush3.bf16.msra.mxu0 %v3919_v37  ;;  %v4499_v35 = vld [vmem:[%s4368_s30 + $0x60] sm:$0xff]   ;;  %v4506_v37 = vld [vmem:[%s4362_s24 + $0x68] sm:$0xff]  }
  0x7e   : >> { %3408 = vmatprep.subr.bf16.mxu1 %v3920_v39  ;;  %3456 = vmatprep.subr.bf16.mxu0 %v3921_v40 }
  0x7f   : >> { %3410 = vmatprep.mubr.bf16.mxu1 %v4400_v41  ;;  %3458 = vmatprep.mubr.bf16.mxu0 %v4403_v42 }
  0x81   : >> { %3409 = vmatpush3.bf16.msra.mxu1 %v3920_v39  ;;  %3457 = vmatpush3.bf16.msra.mxu0 %v3921_v40  ;;  %v4509_v39 = vld [vmem:[%s4368_s30 + $0x68] sm:$0xff]   ;;  %v4512_v40 = vld [vmem:[%s4362_s24 + $0x70] sm:$0xff]  }
  0x82   : >> { %3490 = vmatprep.subr.bf16.mxu1 %v3926_v43  ;;  %3538 = vmatprep.subr.bf16.mxu0 %v3927_v45 }
  0x84   : >> { %3411 = vmatmul.mubr.bf16.vlgmr.msra.gmra.mxu1 %v4408_v44  ;;  %3459 = vmatmul.mubr.bf16.vlgmr.msra.gmra.mxu0 %v4413_v46 }
  0x85   : >> { %3491 = vmatpush3.bf16.msra.mxu1 %v3926_v43  ;;  %3539 = vmatpush3.bf16.msra.mxu0 %v3927_v45  ;;  %v4515_v43 = vld [vmem:[%s4368_s30 + $0x70] sm:$0xff]   ;;  %v4522_v45 = vld [vmem:[%s4362_s24 + $0x78] sm:$0xff]  }
  0x86   : >> { %3414 = vmatprep.mubr.bf16.mxu1 %v4416_v47  ;;  %3462 = vmatprep.mubr.bf16.mxu0 %v4419_v48  ;;  %5081 = vst [vmem:[#allocation12_spill] sm:$0xff] %v4522_v45 }
  0x87   : >> { %3492 = vmatprep.subr.bf16.mxu1 %v3932_v49  ;;  %3540 = vmatprep.subr.bf16.mxu0 %v3933_v50 }
  0x89   : >> { %3493 = vmatpush3.bf16.msra.mxu1 %v3932_v49  ;;  %3541 = vmatpush3.bf16.msra.mxu0 %v3933_v50  ;;  %v4525_v49 = vld [vmem:[%s4368_s30 + $0x78] sm:$0xff]   ;;  %v3972_v50 = vld [vmem:[#allocation5 + $0x1f0] sm:$0xff]  }
  0x8a   : >> { %3494 = vmatprep.subr.bf16.mxu1 %v3938_v51  ;;  %3542 = vmatprep.subr.bf16.mxu0 %v3939_v53  ;;  %5082 = vst [vmem:[#allocation13_spill] sm:$0xff] %v4525_v49 }
  0x8c   : >> { %3415 = vmatmul.mubr.bf16.gmra.mxu1 %v4426_v52  ;;  %3463 = vmatmul.mubr.bf16.gmra.mxu0 %v4429_v54 }
  0x8d   : >> { %3418 = vmatprep.mubr.bf16.mxu1 %v4432_v55  ;;  %3466 = vmatprep.mubr.bf16.mxu0 %v4435_v56 }
  0x8e   : >> { %3495 = vmatpush3.bf16.msra.mxu1 %v3938_v51  ;;  %3543 = vmatpush3.bf16.msra.mxu0 %v3939_v53  ;;  %v3973_v51 = vld [vmem:[#allocation5 + $0x170] sm:$0xff]   ;;  %v3974_v53 = vld [vmem:[#allocation5 + $0x1e8] sm:$0xff]  }
  0x8f   : >> { %3496 = vmatprep.subr.bf16.mxu1 %v3944_v57  ;;  %3544 = vmatprep.subr.bf16.mxu0 %v3945_v58 }
  0x92   : >> { %3497 = vmatpush3.bf16.msra.mxu1 %v3944_v57  ;;  %3545 = vmatpush3.bf16.msra.mxu0 %v3945_v58  ;;  %v3975_v57 = vld [vmem:[#allocation5 + $0x168] sm:$0xff]   ;;  %v3977_v58 = vld [vmem:[#allocation5 + $0x160] sm:$0xff]  }
  0x93   : >> { %3498 = vmatprep.subr.bf16.mxu1 %v3950_v61  ;;  %3546 = vmatprep.subr.bf16.mxu0 %v3951_v62 }
  0x94   : >> { %3419 = vmatmul.mubr.bf16.gmra.mxu1 %v4442_v59  ;;  %3467 = vmatmul.mubr.bf16.gmra.mxu0 %v4445_v60 }
  0x95   : >> { %3422 = vmatprep.mubr.bf16.mxu1 %v4448_v63  ;;  %3470 = vmatprep.mubr.bf16.mxu0 %v4451_v1 }
  0x96   : >> { %3499 = vmatpush3.bf16.msra.mxu1 %v3950_v61  ;;  %3547 = vmatpush3.bf16.msra.mxu0 %v3951_v62  ;;  %v3978_v61 = vld [vmem:[#allocation5 + $0x1d8] sm:$0xff]  }
  0x97   : >> { %3500 = vmatprep.subr.bf16.mxu1 %v3956_v2  ;;  %3548 = vmatprep.subr.bf16.mxu0 %v3957_v3  ;;  %v3979_v62 = vld [vmem:[#allocation5 + $0x158] sm:$0xff]  }
  0x9a   : >> { %3501 = vmatpush3.bf16.msra.mxu1 %v3956_v2  ;;  %3549 = vmatpush3.bf16.msra.mxu0 %v3957_v3  ;;  %v3980_v2 = vld [vmem:[#allocation5 + $0x1d0] sm:$0xff]  }
  0x9b   : >> { %3502 = vmatprep.subr.bf16.mxu1 %v3962_v8  ;;  %3550 = vmatprep.subr.bf16.mxu0 %v3963_v9  ;;  %v3981_v3 = vld [vmem:[#allocation5 + $0x150] sm:$0xff]  }
  0x9c   : >> { %3423 = vmatmul.mubr.bf16.gmra.mxu1 %v4458_v4  ;;  %3471 = vmatmul.mubr.bf16.gmra.mxu0 %v4461_v7 }
  0x9d   : >> { %3426 = vmatprep.mubr.bf16.mxu1 %v4464_v10  ;;  %3474 = vmatprep.mubr.bf16.mxu0 %v4467_v11 }
  0x9e   : >> { %3503 = vmatpush3.bf16.msra.mxu1 %v3962_v8  ;;  %3551 = vmatpush3.bf16.msra.mxu0 %v3963_v9  ;;  %v3982_v8 = vld [vmem:[#allocation5 + $0x1c8] sm:$0xff]  }
  0x9f   : >> { %3504 = vmatprep.subr.bf16.mxu1 %v3968_v13  ;;  %3552 = vmatprep.subr.bf16.mxu0 %v3969_v15  ;;  %v3983_v9 = vld [vmem:[#allocation5 + $0x148] sm:$0xff]  }
  0xa2   : >> { %3505 = vmatpush3.bf16.msra.mxu1 %v3968_v13  ;;  %3553 = vmatpush3.bf16.msra.mxu0 %v3969_v15  ;;  %v3984_v13 = vld [vmem:[#allocation5 + $0x1c0] sm:$0xff]  }
  0xa3   : >> { %3586 = vmatprep.subr.bf16.mxu1 %v3970_v21  ;;  %3634 = vmatprep.subr.bf16.mxu0 %v3971_v23  ;;  %v3985_v15 = vld [vmem:[#allocation5 + $0x140] sm:$0xff]  }
  0xa4   : >> { %3427 = vmatmul.mubr.bf16.gmra.mxu1 %v4474_v16  ;;  %3475 = vmatmul.mubr.bf16.gmra.mxu0 %v4477_v19 }
  0xa5   : >> { %3430 = vmatprep.mubr.bf16.mxu1 %v4480_v24  ;;  %3478 = vmatprep.mubr.bf16.mxu0 %v4483_v27 }
  0xac   : >> { %3431 = vmatmul.mubr.bf16.gmra.mxu1 %v4490_v29  ;;  %3479 = vmatmul.mubr.bf16.gmra.mxu0 %v4493_v31 }
  0xad   : >> { %3434 = vmatprep.mubr.bf16.mxu1 %v4496_v32  ;;  %3482 = vmatprep.mubr.bf16.mxu0 %v4499_v35 }
  0xb4   : >> { %3435 = vmatmul.mubr.bf16.gmra.mxu1 %v4506_v37  ;;  %3483 = vmatmul.mubr.bf16.gmra.mxu0 %v4509_v39 }
  0xb5   : >> { %3438 = vmatprep.mubr.bf16.mxu1 %v4512_v40  ;;  %3486 = vmatprep.mubr.bf16.mxu0 %v4515_v43 }
  0xbc   : >> { %3439 = vmatmul.mubr.bf16.gmra.mxu1 %v4522_v45  ;;  %3487 = vmatmul.mubr.bf16.gmra.mxu0 %v4525_v49 }
  0xbd   : >> { %3506 = vmatprep.mubr.bf16.mxu1 %v4330_v5  ;;  %3554 = vmatprep.mubr.bf16.mxu0 %v4400_v41  ;;  %v3976_v5 = vld [vmem:[#allocation5 + $0x1e0] sm:$0xff]  }
  0xc4   : >> { %3507 = vmatmul.mubr.bf16.vlgmr.msra.gmra.mxu1 %v4338_v12  ;;  %3555 = vmatmul.mubr.bf16.vlgmr.msra.gmra.mxu0 %v4408_v44 }
  0xc5   : >> { %3587 = vmatpush3.bf16.msra.mxu1 %v3970_v21  ;;  %3635 = vmatpush3.bf16.msra.mxu0 %v3971_v23  ;;  %v3986_v21 = vld [vmem:[#allocation5 + $0xb8] sm:$0xff]  }
  0xc6   : >> { %3510 = vmatprep.mubr.bf16.mxu1 %v4345_v17  ;;  %3558 = vmatprep.mubr.bf16.mxu0 %v4416_v47  ;;  %v3987_v23 = vld [vmem:[#allocation5 + $0x238] sm:$0xff]  }
  0xc7   : >> { %3588 = vmatprep.subr.bf16.mxu1 %v3972_v50  ;;  %3636 = vmatprep.subr.bf16.mxu0 %v3973_v51 }
  0xc9   : >> { %3589 = vmatpush3.bf16.msra.mxu1 %v3972_v50  ;;  %3637 = vmatpush3.bf16.msra.mxu0 %v3973_v51  ;;  %v3989_v50 = vld [vmem:[#allocation5 + $0x230] sm:$0xff]   ;;  %v3990_v51 = vld [vmem:[#allocation5 + $0xa8] sm:$0xff]  }
  0xca   : >> { %3590 = vmatprep.subr.bf16.mxu1 %v3974_v53  ;;  %3638 = vmatprep.subr.bf16.mxu0 %v3975_v57 }
  0xcc   : >> { %3511 = vmatmul.mubr.bf16.gmra.mxu1 %v4354_v20  ;;  %3559 = vmatmul.mubr.bf16.gmra.mxu0 %v4426_v52 }
  0xcd   : >> { %3514 = vmatprep.mubr.bf16.mxu1 %v4365_v25  ;;  %3562 = vmatprep.mubr.bf16.mxu0 %v4432_v55 }
  0xce   : >> { %3591 = vmatpush3.bf16.msra.mxu1 %v3974_v53  ;;  %3639 = vmatpush3.bf16.msra.mxu0 %v3975_v57  ;;  %v3991_v53 = vld [vmem:[#allocation5 + $0x228] sm:$0xff]   ;;  %v3992_v57 = vld [vmem:[#allocation5 + $0xa0] sm:$0xff]  }
  0xcf   : >> { %3592 = vmatprep.subr.bf16.mxu1 %v3976_v5  ;;  %3640 = vmatprep.subr.bf16.mxu0 %v3977_v58 }
  0xd2   : >> { %3593 = vmatpush3.bf16.msra.mxu1 %v3976_v5  ;;  %3641 = vmatpush3.bf16.msra.mxu0 %v3977_v58  ;;  %v3993_v5 = vld [vmem:[#allocation5 + $0x220] sm:$0xff]   ;;  %v3996_v58 = vld [vmem:[#allocation5 + $0x90] sm:$0xff]  }
  0xd3   : >> { %3594 = vmatprep.subr.bf16.mxu1 %v3978_v61  ;;  %3642 = vmatprep.subr.bf16.mxu0 %v3979_v62 }
  0xd4   : >> { %3515 = vmatmul.mubr.bf16.gmra.mxu1 %v4376_v28  ;;  %3563 = vmatmul.mubr.bf16.gmra.mxu0 %v4442_v59 }
  0xd5   : >> { %3518 = vmatprep.mubr.bf16.mxu1 %v4384_v33  ;;  %3566 = vmatprep.mubr.bf16.mxu0 %v4448_v63 }
  0xd6   : >> { %3595 = vmatpush3.bf16.msra.mxu1 %v3978_v61  ;;  %3643 = vmatpush3.bf16.msra.mxu0 %v3979_v62  ;;  %v3997_v61 = vld [vmem:[#allocation5 + $0x210] sm:$0xff]   ;;  %v4000_v62 = vld [vmem:[#allocation5 + $0x80] sm:$0xff]  }
  0xd7   : >> { %3596 = vmatprep.subr.bf16.mxu1 %v3980_v2  ;;  %3644 = vmatprep.subr.bf16.mxu0 %v3981_v3 }
  0xda   : >> { %3597 = vmatpush3.bf16.msra.mxu1 %v3980_v2  ;;  %3645 = vmatpush3.bf16.msra.mxu0 %v3981_v3  ;;  %v4001_v2 = vld [vmem:[#allocation5 + $0x200] sm:$0xff]  }
  0xdb   : >> { %3598 = vmatprep.subr.bf16.mxu1 %v3982_v8  ;;  %3646 = vmatprep.subr.bf16.mxu0 %v3983_v9 }
  0xdc   : >> { %3519 = vmatmul.mubr.bf16.gmra.mxu1 %v4392_v36  ;;  %3567 = vmatmul.mubr.bf16.gmra.mxu0 %v4458_v4 }
  0xdd   : >> { %3522 = vmatprep.mubr.bf16.mxu1 %v4333_v6  ;;  %3570 = vmatprep.mubr.bf16.mxu0 %v4464_v10  ;;  %v4002_v6 = vld [vmem:[%s4327_s9] sm:$0xff]  }
  0xde   : >> { %3599 = vmatpush3.bf16.msra.mxu1 %v3982_v8  ;;  %3647 = vmatpush3.bf16.msra.mxu0 %v3983_v9  ;;  %v4004_v8 = vld [vmem:[%s4327_s9 + $0x48] sm:$0xff]  }
  0xdf   : >> { %3600 = vmatprep.subr.bf16.mxu1 %v3984_v13  ;;  %3648 = vmatprep.subr.bf16.mxu0 %v3985_v15 }
  0xe2   : >> { %3601 = vmatpush3.bf16.msra.mxu1 %v3984_v13  ;;  %3649 = vmatpush3.bf16.msra.mxu0 %v3985_v15 }
  0xe3   : >> { %3682 = vmatprep.subr.bf16.mxu1 %v3986_v21  ;;  %3730 = vmatprep.subr.bf16.mxu0 %v3987_v23 }
  0xe4   : >> { %3523 = vmatmul.mubr.bf16.gmra.mxu1 %v4341_v14  ;;  %3571 = vmatmul.mubr.bf16.gmra.mxu0 %v4474_v16  ;;  %v3988_v14 = vld [vmem:[#allocation5 + $0xb0] sm:$0xff]  }
  0xe5   : >> { %3526 = vmatprep.mubr.bf16.mxu1 %v4348_v18  ;;  %3574 = vmatprep.mubr.bf16.mxu0 %v4480_v24 }
  0xec   : >> { %3527 = vmatmul.mubr.bf16.gmra.mxu1 %v4359_v22  ;;  %3575 = vmatmul.mubr.bf16.gmra.mxu0 %v4490_v29 }
  0xed   : >> { %3530 = vmatprep.mubr.bf16.mxu1 %v4371_v26  ;;  %3578 = vmatprep.mubr.bf16.mxu0 %v4496_v32 }
  0xf4   : >> { %3531 = vmatmul.mubr.bf16.gmra.mxu1 %v4381_v30  ;;  %3579 = vmatmul.mubr.bf16.gmra.mxu0 %v4506_v37 }
  0xf5   : >> { %3534 = vmatprep.mubr.bf16.mxu1 %v4387_v34  ;;  %3582 = vmatprep.mubr.bf16.mxu0 %v4512_v40 }
  0xfc   : >> { %3535 = vmatmul.mubr.bf16.gmra.mxu1 %v4397_v38  ;;  %3583 = vmatmul.mubr.bf16.gmra.mxu0 %v4522_v45 }
  0xfd   : >> { %3602 = vmatprep.mubr.bf16.mxu1 %v4403_v42  ;;  %3650 = vmatprep.mubr.bf16.mxu0 %v4002_v6 }
 0x104   : >> { %3603 = vmatmul.mubr.bf16.vlgmr.msra.gmra.mxu1 %v4413_v46  ;;  %3651 = vmatmul.mubr.bf16.vlgmr.msra.gmra.mxu0 %v4338_v12  ;;  %v3994_v12 = vld [vmem:[#allocation5 + $0x98] sm:$0xff]  }
 0x105   : >> { %3683 = vmatpush3.bf16.msra.mxu1 %v3986_v21  ;;  %3731 = vmatpush3.bf16.msra.mxu0 %v3987_v23 }
 0x106   : >> { %3606 = vmatprep.mubr.bf16.mxu1 %v4419_v48  ;;  %3654 = vmatprep.mubr.bf16.mxu0 %v4345_v17  ;;  %v3995_v17 = vld [vmem:[#allocation5 + $0x218] sm:$0xff]  }
 0x107   : >> { %3684 = vmatprep.subr.bf16.mxu1 %v3988_v14  ;;  %3732 = vmatprep.subr.bf16.mxu0 %v3989_v50 }
 0x109   : >> { %3685 = vmatpush3.bf16.msra.mxu1 %v3988_v14  ;;  %3733 = vmatpush3.bf16.msra.mxu0 %v3989_v50 }
 0x10a   : >> { %3686 = vmatprep.subr.bf16.mxu1 %v3990_v51  ;;  %3734 = vmatprep.subr.bf16.mxu0 %v3991_v53 }
 0x10c   : >> { %3607 = vmatmul.mubr.bf16.gmra.mxu1 %v4429_v54  ;;  %3655 = vmatmul.mubr.bf16.gmra.mxu0 %v4354_v20  ;;  %v3998_v20 = vld [vmem:[#allocation5 + $0x88] sm:$0xff]  }
 0x10d   : >> { %3610 = vmatprep.mubr.bf16.mxu1 %v4435_v56  ;;  %3658 = vmatprep.mubr.bf16.mxu0 %v4365_v25  ;;  %v3999_v25 = vld [vmem:[#allocation5 + $0x208] sm:$0xff]  }
 0x10e   : >> { %3687 = vmatpush3.bf16.msra.mxu1 %v3990_v51  ;;  %3735 = vmatpush3.bf16.msra.mxu0 %v3991_v53 }
 0x10f   : >> { %3688 = vmatprep.subr.bf16.mxu1 %v3992_v57  ;;  %3736 = vmatprep.subr.bf16.mxu0 %v3993_v5 }
 0x112   : >> { %3689 = vmatpush3.bf16.msra.mxu1 %v3992_v57  ;;  %3737 = vmatpush3.bf16.msra.mxu0 %v3993_v5 }
 0x113   : >> { %3690 = vmatprep.subr.bf16.mxu1 %v3994_v12  ;;  %3738 = vmatprep.subr.bf16.mxu0 %v3995_v17 }
 0x114   : >> { %3611 = vmatmul.mubr.bf16.gmra.mxu1 %v4445_v60  ;;  %3659 = vmatmul.mubr.bf16.gmra.mxu0 %v4376_v28  ;;  %v4003_v28 = vld [vmem:[%s4327_s9 + $0x40] sm:$0xff]   ;;  %s5012_s9 = scalar_lea.hbm (%p254_p1), %s5066_s3, %s3127_s22 }
 0x115   : >> { %3614 = vmatprep.mubr.bf16.mxu1 %v4451_v1  ;;  %3662 = vmatprep.mubr.bf16.mxu0 %v4384_v33 }
 0x116   : >> { %3691 = vmatpush3.bf16.msra.mxu1 %v3994_v12  ;;  %3739 = vmatpush3.bf16.msra.mxu0 %v3995_v17 }
 0x117   : >> { %3692 = vmatprep.subr.bf16.mxu1 %v3996_v58  ;;  %3740 = vmatprep.subr.bf16.mxu0 %v3997_v61 }
 0x11a   : >> { %3693 = vmatpush3.bf16.msra.mxu1 %v3996_v58  ;;  %3741 = vmatpush3.bf16.msra.mxu0 %v3997_v61 }
 0x11b   : >> { %3694 = vmatprep.subr.bf16.mxu1 %v3998_v20  ;;  %3742 = vmatprep.subr.bf16.mxu0 %v3999_v25 }
 0x11c   : >> { %3615 = vmatmul.mubr.bf16.gmra.mxu1 %v4461_v7  ;;  %3663 = vmatmul.mubr.bf16.gmra.mxu0 %v4392_v36 }
 0x11d   : >> { %3618 = vmatprep.mubr.bf16.mxu1 %v4467_v11  ;;  %3666 = vmatprep.mubr.bf16.mxu0 %v4003_v28 }
 0x11e   : >> { %3695 = vmatpush3.bf16.msra.mxu1 %v3998_v20  ;;  %3743 = vmatpush3.bf16.msra.mxu0 %v3999_v25 }
 0x11f   : >> { %3696 = vmatprep.subr.bf16.mxu1 %v4000_v62  ;;  %3744 = vmatprep.subr.bf16.mxu0 %v4001_v2 }
 0x122   : >> { %3697 = vmatpush3.bf16.msra.mxu1 %v4000_v62  ;;  %3745 = vmatpush3.bf16.msra.mxu0 %v4001_v2 }
 0x124   : >> { %v3364_v33 = vpop.f32.mrf.mxu0  ;;  %v4579_v3 = vpop.f32.mrf.mxu1  ;;  %3619 = vmatmul.mubr.bf16.gmra.mxu1 %v4477_v19  ;;  %3667 = vmatmul.mubr.bf16.gmra.mxu0 %v4004_v8 }
 0x125   : >> { %3622 = vmatprep.mubr.bf16.mxu1 %v4483_v27  ;;  %3670 = vmatprep.mubr.bf16.mxu0 %v4348_v18 }
 0x126   : >> { %v546_v36 = vpop.f32.mrf.mxu0  ;;  %v4585_v9 = vpop.f32.mrf.mxu1 }
 0x128   : >> { %v3365_v13 = vpop.f32.mrf.mxu0  ;;  %v3381_v15 = vpop.f32.mrf.mxu1 }
 0x12a   : >> { %v549_v21 = vpop.f32.mrf.mxu0  ;;  %v4587_v23 = vpop.f32.mrf.mxu1 }
 0x12c   : >> { %v3368_v6 = vpop.f32.mrf.mxu0  ;;  %v4589_v14 = vpop.f32.mrf.mxu1  ;;  %3623 = vmatmul.mubr.bf16.gmra.mxu1 %v4493_v31  ;;  %3671 = vmatmul.mubr.bf16.gmra.mxu0 %v4359_v22 }
 0x12d   : >> { %3626 = vmatprep.mubr.bf16.mxu1 %v4499_v35  ;;  %3674 = vmatprep.mubr.bf16.mxu0 %v4371_v26 }
 0x12e   : >> { %v4595_v18 = vpop.f32.mrf.mxu0  ;;  %v4597_v50 = vpop.f32.mrf.mxu1 }
 0x130   : >> { %v3369_v51 = vpop.f32.mrf.mxu0  ;;  %v3385_v53 = vpop.f32.mrf.mxu1 }
 0x132   : >> { %v4599_v57 = vpop.f32.mrf.mxu0  ;;  %v4601_v5 = vpop.f32.mrf.mxu1 }
 0x134   : >> { %v4603_v12 = vpop.f32.mrf.mxu0  ;;  %v4605_v17 = vpop.f32.mrf.mxu1  ;;  %3627 = vmatmul.mubr.bf16.gmra.mxu1 %v4509_v39  ;;  %3675 = vmatmul.mubr.bf16.gmra.mxu0 %v4381_v30 }
 0x135   : >> { %3630 = vmatprep.mubr.bf16.mxu1 %v4515_v43  ;;  %3678 = vmatprep.mubr.bf16.mxu0 %v4387_v34 }
 0x136   : >> { %v4611_v22 = vpop.f32.mrf.mxu0  ;;  %v4613_v26 = vpop.f32.mrf.mxu1 }
 0x138   : >> { %v3373_v58 = vpop.f32.mrf.mxu0  ;;  %v3389_v61 = vpop.f32.mrf.mxu1 }
 0x139   : >> { %v1362_v58 = vlaneseq }
 0x13a   : >> { %v4615_v20 = vpop.f32.mrf.mxu0  ;;  %v4617_v25 = vpop.f32.mrf.mxu1 }
 0x13c   : >> { %v4619_v62 = vpop.f32.mrf.mxu0  ;;  %v4621_v2 = vpop.f32.mrf.mxu1  ;;  %3631 = vmatmul.mubr.bf16.gmra.mxu1 %v4525_v49  ;;  %3679 = vmatmul.mubr.bf16.gmra.mxu0 %v4397_v38  ;;  %v4639_v49 = vshrl.u32 %v1362_v58, 7 }
 0x13d   : >> { %5083 = vst [vmem:[#allocation14_spill] sm:$0xff] %v4621_v2  ;;  %3698 = vmatprep.mubr.bf16.mxu1 %v4400_v41  ;;  %3746 = vmatprep.mubr.bf16.mxu0 %v4403_v42 }
 0x13e   : >> { %v4627_v30 = vpop.f32.mrf.mxu0  ;;  %v4629_v34 = vpop.f32.mrf.mxu1  ;;  %vm1364_vm0 = vcmp.lt.s32.totalorder %v4639_v49, 1  ;;  %vm2745_vm1 = vcmp.lt.s32.totalorder %v4639_v49, 7 }
 0x13f   : >> { %5084 = vst [vmem:[#allocation15_spill] sm:$0xff] %v4629_v34 }
 0x140   : >> { %v3377_v28 = vpop.f32.mrf.mxu0  ;;  %v3393_v8 = vpop.f32.mrf.mxu1 }
 0x142   : >> { %v4631_v13 = vpop.f32.mrf.mxu0  ;;  %v4633_v15 = vpop.f32.mrf.mxu1 }
 0x143   : >> { %5085 = vst [vmem:[#allocation16_spill] sm:$0xff] %v4633_v15 }
 0x144   : >> { %v3412_v51 = vpop.f32.mrf.mxu1  ;;  %v3460_v53 = vpop.f32.mrf.mxu0  ;;  %3699 = vmatmul.mubr.bf16.vlgmr.msra.gmra.mxu1 %v4408_v44  ;;  %3747 = vmatmul.mubr.bf16.vlgmr.msra.gmra.mxu0 %v4413_v46 }
 0x145   : >> { %v852_v38 = vadd.f32 %v3412_v51, %v3364_v33  ;;  %3702 = vmatprep.mubr.bf16.mxu1 %v4416_v47  ;;  %3750 = vmatprep.mubr.bf16.mxu0 %v4419_v48 }
 0x146   : >> { %v843_v41 = vpop.f32.mrf.mxu1  ;;  %v1195_v42 = vpop.f32.mrf.mxu0 }
 0x147   : >> { %v1316_v61 = vadd.f32 %v3460_v53, %v852_v38  ;;  %v844_v28 = vadd.f32 %v843_v41, %v546_v36 }
 0x148   : >> { %v3413_v8 = vpop.f32.mrf.mxu1  ;;  %v3461_v0 = vpop.f32.mrf.mxu0 }
 0x149   : >> { %v1314_v34 = vadd.f32 %v1195_v42, %v844_v28  ;;  %v1340_v33 = vrot.slane %v1316_v61, 7 }
 0x14a   : >> { %v846_v15 = vpop.f32.mrf.mxu1  ;;  %v1198_v2 = vpop.f32.mrf.mxu0 }
 0x14b   : >> { %v847_v44 = vadd.f32 %v846_v15, %v549_v21  ;;  %v1338_v51 = vrot.slane %v1314_v34, 7 }
 0x14c   : >> { %v3416_v45 = vpop.f32.mrf.mxu1  ;;  %v3464_v46 = vpop.f32.mrf.mxu0  ;;  %3703 = vmatmul.mubr.bf16.gmra.mxu1 %v4426_v52  ;;  %3751 = vmatmul.mubr.bf16.gmra.mxu0 %v4429_v54 }
 0x14d   : >> { %v1315_v47 = vadd.f32 %v1198_v2, %v847_v44  ;;  %v867_v48 = vadd.f32 %v3416_v45, %v3368_v6  ;;  %3706 = vmatprep.mubr.bf16.mxu1 %v4432_v55  ;;  %3754 = vmatprep.mubr.bf16.mxu0 %v4435_v56 }
 0x14e   : >> { %v858_v0 = vpop.f32.mrf.mxu1  ;;  %v1210_v36 = vpop.f32.mrf.mxu0 }
 0x14f   : >> { %v1339_v53 = vrot.slane %v1315_v47, 7  ;;  %v1319_v21 = vadd.f32 %v3464_v46, %v867_v48  ;;  %v859_v15 = vadd.f32 %v858_v0, %v4595_v18 }
 0x150   : >> { %v3417_v38 = vpop.f32.mrf.mxu1  ;;  %v3465_v52 = vpop.f32.mrf.mxu0 }
 0x151   : >> { %v1317_v41 = vadd.f32 %v1210_v36, %v859_v15  ;;  %v4649_v54 = vsel %vm1364_vm0, %v1339_v53, %v1340_v33  ;;  %v4653_v55 = vsel %vm1364_vm0, %v1338_v51, %v1339_v53  ;;  %v1343_v58 = vrot.slane %v1319_v21, 7 }
 0x152   : >> { %v861_v56 = vpop.f32.mrf.mxu1  ;;  %v1213_v45 = vpop.f32.mrf.mxu0 }
 0x153   : >> { %v862_v6 = vadd.f32 %v861_v56, %v4599_v57  ;;  %v1341_v8 = vrot.slane %v1317_v41, 7 }
 0x154   : >> { %v3420_v2 = vpop.f32.mrf.mxu1  ;;  %v3468_v34 = vpop.f32.mrf.mxu0  ;;  %3707 = vmatmul.mubr.bf16.gmra.mxu1 %v4442_v59  ;;  %3755 = vmatmul.mubr.bf16.gmra.mxu0 %v4445_v60 }
 0x155   : >> { %v1318_v18 = vadd.f32 %v1213_v45, %v862_v6  ;;  %v882_v42 = vadd.f32 %v3420_v2, %v4603_v12  ;;  %3710 = vmatprep.mubr.bf16.mxu1 %v4448_v63  ;;  %3758 = vmatprep.mubr.bf16.mxu0 %v4451_v1 }
 0x156   : >> { %v873_v61 = vpop.f32.mrf.mxu1  ;;  %v1225_v28 = vpop.f32.mrf.mxu0 }
 0x157   : >> { %v1342_v44 = vrot.slane %v1318_v18, 7  ;;  %v1322_v46 = vadd.f32 %v3468_v34, %v882_v42  ;;  %v874_v57 = vadd.f32 %v873_v61, %v4611_v22 }
 0x158   : >> { %v3421_v47 = vpop.f32.mrf.mxu1  ;;  %v3469_v48 = vpop.f32.mrf.mxu0 }
 0x159   : >> { %v1320_v59 = vadd.f32 %v1225_v28, %v874_v57  ;;  %v4664_v60 = vsel %vm1364_vm0, %v1342_v44, %v1343_v58  ;;  %v4668_v63 = vsel %vm1364_vm0, %v1341_v8, %v1342_v44  ;;  %v1346_v53 = vrot.slane %v1322_v46, 7 }
 0x15a   : >> { %v876_v1 = vpop.f32.mrf.mxu1  ;;  %v1228_v12 = vpop.f32.mrf.mxu0 }
 0x15b   : >> { %v877_v33 = vadd.f32 %v876_v1, %v4615_v20  ;;  %v1344_v38 = vrot.slane %v1320_v59, 7 }
 0x15c   : >> { %v3424_v0 = vpop.f32.mrf.mxu1  ;;  %v3472_v36 = vpop.f32.mrf.mxu0  ;;  %3711 = vmatmul.mubr.bf16.gmra.mxu1 %v4458_v4  ;;  %3759 = vmatmul.mubr.bf16.gmra.mxu0 %v4461_v7 }
 0x15d   : >> { %v1321_v22 = vadd.f32 %v1228_v12, %v877_v33  ;;  %v897_v51 = vadd.f32 %v3424_v0, %v4619_v62  ;;  %3714 = vmatprep.mubr.bf16.mxu1 %v4464_v10  ;;  %3762 = vmatprep.mubr.bf16.mxu0 %v4467_v11 }
 0x15e   : >> { %v888_v21 = vpop.f32.mrf.mxu1  ;;  %v1240_v15 = vpop.f32.mrf.mxu0 }
 0x15f   : >> { %v1345_v52 = vrot.slane %v1321_v22, 7  ;;  %v1325_v41 = vadd.f32 %v3472_v36, %v897_v51  ;;  %v889_v20 = vadd.f32 %v888_v21, %v4627_v30 }
 0x160   : >> { %v3425_v56 = vpop.f32.mrf.mxu1  ;;  %v3473_v45 = vpop.f32.mrf.mxu0 }
 0x161   : >> { %v1323_v4 = vadd.f32 %v1240_v15, %v889_v20  ;;  %v4679_v7 = vsel %vm1364_vm0, %v1345_v52, %v1346_v53  ;;  %v4683_v10 = vsel %vm1364_vm0, %v1344_v38, %v1345_v52  ;;  %v1349_v42 = vrot.slane %v1325_v41, 7 }
 0x162   : >> { %v891_v11 = vpop.f32.mrf.mxu1  ;;  %v1243_v62 = vpop.f32.mrf.mxu0 }
 0x163   : >> { %v892_v6 = vadd.f32 %v891_v11, %v4631_v13  ;;  %v1347_v28 = vrot.slane %v1323_v4, 7 }
 0x164   : >> { %v3428_v2 = vpop.f32.mrf.mxu1  ;;  %v3476_v34 = vpop.f32.mrf.mxu0  ;;  %3715 = vmatmul.mubr.bf16.gmra.mxu1 %v4474_v16  ;;  %3763 = vmatmul.mubr.bf16.gmra.mxu0 %v4477_v19 }
 0x165   : >> { %v1324_v30 = vadd.f32 %v1243_v62, %v892_v6  ;;  %v912_v18 = vadd.f32 %v3428_v2, %v4579_v3  ;;  %3718 = vmatprep.mubr.bf16.mxu1 %v4480_v24  ;;  %3766 = vmatprep.mubr.bf16.mxu0 %v4483_v27 }
 0x166   : >> { %v903_v58 = vpop.f32.mrf.mxu1  ;;  %v1255_v61 = vpop.f32.mrf.mxu0 }
 0x167   : >> { %v1348_v8 = vrot.slane %v1324_v30, 7  ;;  %v1328_v44 = vadd.f32 %v3476_v34, %v912_v18  ;;  %v904_v13 = vadd.f32 %v903_v58, %v4585_v9 }
 0x168   : >> { %v3429_v46 = vpop.f32.mrf.mxu1  ;;  %v3477_v57 = vpop.f32.mrf.mxu0 }
 0x169   : >> { %v1326_v16 = vadd.f32 %v1255_v61, %v904_v13  ;;  %v4694_v19 = vsel %vm1364_vm0, %v1348_v8, %v1349_v42  ;;  %v4698_v24 = vsel %vm1364_vm0, %v1347_v28, %v1348_v8  ;;  %v1352_v12 = vrot.slane %v1328_v44, 7  ;;  %v5086_v42 = vld [vmem:[#allocation12_spill] sm:$0xff]  ;;  %v5088_v61 = vld [vmem:[#allocation14_spill] sm:$0xff] }
 0x16a   : >> { %v906_v27 = vpop.f32.mrf.mxu1  ;;  %v1258_v3 = vpop.f32.mrf.mxu0 }
 0x16b   : >> { %v907_v47 = vadd.f32 %v906_v27, %v4587_v23  ;;  %v1350_v36 = vrot.slane %v1326_v16, 7  ;;  %v5089_v27 = vld [vmem:[#allocation15_spill] sm:$0xff] }
 0x16c   : >> { %v3432_v48 = vpop.f32.mrf.mxu1  ;;  %v3480_v59 = vpop.f32.mrf.mxu0  ;;  %3719 = vmatmul.mubr.bf16.gmra.mxu1 %v4490_v29  ;;  %3767 = vmatmul.mubr.bf16.gmra.mxu0 %v4493_v31 }
 0x16d   : >> { %v1327_v9 = vadd.f32 %v1258_v3, %v907_v47  ;;  %v927_v1 = vadd.f32 %v3432_v48, %v4589_v14  ;;  %3722 = vmatprep.mubr.bf16.mxu1 %v4496_v32  ;;  %3770 = vmatprep.mubr.bf16.mxu0 %v4499_v35 }
 0x16e   : >> { %v918_v33 = vpop.f32.mrf.mxu1  ;;  %v1270_v0 = vpop.f32.mrf.mxu0 }
 0x16f   : >> { %v1351_v22 = vrot.slane %v1327_v9, 7  ;;  %v1331_v51 = vadd.f32 %v3480_v59, %v927_v1  ;;  %v919_v23 = vadd.f32 %v918_v33, %v4597_v50  ;;  %v5090_v33 = vld [vmem:[#allocation16_spill] sm:$0xff] }
 0x170   : >> { %v3433_v53 = vpop.f32.mrf.mxu1  ;;  %v3481_v21 = vpop.f32.mrf.mxu0 }
 0x171   : >> { %v1329_v29 = vadd.f32 %v1270_v0, %v919_v23  ;;  %v4709_v31 = vsel %vm1364_vm0, %v1351_v22, %v1352_v12  ;;  %v4713_v32 = vsel %vm1364_vm0, %v1350_v36, %v1351_v22  ;;  %v1355_v20 = vrot.slane %v1331_v51, 7 }
 0x172   : >> { %v921_v35 = vpop.f32.mrf.mxu1  ;;  %v1273_v14 = vpop.f32.mrf.mxu0 }
 0x173   : >> { %v922_v15 = vadd.f32 %v921_v35, %v4601_v5  ;;  %v1353_v4 = vrot.slane %v1329_v29, 7 }
 0x174   : >> { %v3436_v38 = vpop.f32.mrf.mxu1  ;;  %v3484_v52 = vpop.f32.mrf.mxu0  ;;  %3723 = vmatmul.mubr.bf16.gmra.mxu1 %v4506_v37  ;;  %3771 = vmatmul.mubr.bf16.gmra.mxu0 %v4509_v39 }
 0x175   : >> { %v1330_v50 = vadd.f32 %v1273_v14, %v922_v15  ;;  %v942_v41 = vadd.f32 %v3436_v38, %v4605_v17  ;;  %3726 = vmatprep.mubr.bf16.mxu1 %v4512_v40  ;;  %3774 = vmatprep.mubr.bf16.mxu0 %v4515_v43 }
 0x176   : >> { %v933_v56 = vpop.f32.mrf.mxu1  ;;  %v1285_v45 = vpop.f32.mrf.mxu0 }
 0x177   : >> { %v1354_v11 = vrot.slane %v1330_v50, 7  ;;  %v1334_v62 = vadd.f32 %v3484_v52, %v942_v41  ;;  %v934_v5 = vadd.f32 %v933_v56, %v4613_v26  ;;  %v5087_v26 = vld [vmem:[#allocation13_spill] sm:$0xff] }
 0x178   : >> { %v3437_v6 = vpop.f32.mrf.mxu1  ;;  %v3485_v2 = vpop.f32.mrf.mxu0 }
 0x179   : >> { %v1332_v37 = vadd.f32 %v1285_v45, %v934_v5  ;;  %v4724_v39 = vsel %vm1364_vm0, %v1354_v11, %v1355_v20  ;;  %v4728_v40 = vsel %vm1364_vm0, %v1353_v4, %v1354_v11  ;;  %v1358_v8 = vrot.slane %v1334_v62, 7 }
 0x17a   : >> { %v936_v43 = vpop.f32.mrf.mxu1  ;;  %v1288_v17 = vpop.f32.mrf.mxu0 }
 0x17b   : >> { %v937_v34 = vadd.f32 %v936_v43, %v4617_v25  ;;  %v1356_v46 = vrot.slane %v1332_v37, 7 }
 0x17c   : >> { %v3440_v30 = vpop.f32.mrf.mxu1  ;;  %v3488_v18 = vpop.f32.mrf.mxu0  ;;  %3727 = vmatmul.mubr.bf16.gmra.mxu1 %v5086_v42  ;;  %3775 = vmatmul.mubr.bf16.gmra.mxu0 %v5087_v26 }
 0x17d   : >> { %v1333_v58 = vadd.f32 %v1288_v17, %v937_v34  ;;  %v957_v28 = vadd.f32 %v3440_v30, %v5088_v61 }
 0x17e   : >> { %v948_v44 = vpop.f32.mrf.mxu1  ;;  %v1300_v13 = vpop.f32.mrf.mxu0 }
 0x17f   : >> { %v1357_v57 = vrot.slane %v1333_v58, 7  ;;  %v1337_v16 = vadd.f32 %v3488_v18, %v957_v28  ;;  %v949_v3 = vadd.f32 %v948_v44, %v5089_v27 }
 0x180   : >> { %v3441_v47 = vpop.f32.mrf.mxu1  ;;  %v3489_v48 = vpop.f32.mrf.mxu0 }
 0x181   : >> { %v1335_v25 = vadd.f32 %v1300_v13, %v949_v3  ;;  %v4737_v59 = vsel %vm1364_vm0, %v1357_v57, %v1358_v8  ;;  %v4741_v9 = vsel %vm1364_vm0, %v1356_v46, %v1357_v57  ;;  %v1361_v29 = vrot.slane %v1337_v16, 7 }
 0x182   : >> { %v951_v1 = vpop.f32.mrf.mxu1  ;;  %v1303_v12 = vpop.f32.mrf.mxu0 }
 0x183   : >> { %v952_v0 = vadd.f32 %v951_v1, %v5090_v33  ;;  %v1359_v35 = vrot.slane %v1335_v25, 7 }
 0x184   : >> { %v3508_v36 = vpop.f32.mrf.mxu1  ;;  %v3556_v22 = vpop.f32.mrf.mxu0 }
 0x185   : >> { %v1336_v51 = vadd.f32 %v1303_v12, %v952_v0  ;;  %v4744_v23 = vadd.f32 %v3556_v22, %v3508_v36 }
 0x186   : >> { %v1497_v53 = vpop.f32.mrf.mxu1  ;;  %v1690_v21 = vpop.f32.mrf.mxu0 }
 0x187   : >> { %v1360_v14 = vrot.slane %v1336_v51, 7 }
 0x188   : >> { %v3509_v15 = vpop.f32.mrf.mxu1  ;;  %v3557_v38 = vpop.f32.mrf.mxu0 }
 0x189   : >> { %v4748_v52 = vsel %vm1364_vm0, %v1360_v14, %v1361_v29  ;;  %v4752_v50 = vsel %vm1364_vm0, %v1359_v35, %v1360_v14 }
 0x18a   : >> { %v1499_v41 = vpop.f32.mrf.mxu1  ;;  %v1692_v20 = vpop.f32.mrf.mxu0 }
 0x18b   : >> { %v4754_v56 = vadd.f32 %v1692_v20, %v1499_v41 }
 0x18c   : >> { %v3512_v45 = vpop.f32.mrf.mxu1  ;;  %v3560_v4 = vpop.f32.mrf.mxu0 }
 0x18d   : >> { %v4756_v11 = vadd.f32 %v3560_v4, %v3512_v45 }
 0x18e   : >> { %v1511_v62 = vpop.f32.mrf.mxu1  ;;  %v1704_v5 = vpop.f32.mrf.mxu0 }
 0x190   : >> { %v3513_v6 = vpop.f32.mrf.mxu1  ;;  %v3561_v2 = vpop.f32.mrf.mxu0 }
 0x192   : >> { %v1513_v37 = vpop.f32.mrf.mxu1  ;;  %v1706_v43 = vpop.f32.mrf.mxu0 }
 0x193   : >> { %v4758_v17 = vadd.f32 %v1706_v43, %v1513_v37 }
 0x194   : >> { %v3516_v34 = vpop.f32.mrf.mxu1  ;;  %v3564_v30 = vpop.f32.mrf.mxu0 }
 0x195   : >> { %v4760_v18 = vadd.f32 %v3564_v30, %v3516_v34 }
 0x196   : >> { %v1525_v42 = vpop.f32.mrf.mxu1  ;;  %v1718_v26 = vpop.f32.mrf.mxu0 }
 0x198   : >> { %v3517_v58 = vpop.f32.mrf.mxu1  ;;  %v3565_v61 = vpop.f32.mrf.mxu0 }
 0x19a   : >> { %v1527_v28 = vpop.f32.mrf.mxu1  ;;  %v1720_v8 = vpop.f32.mrf.mxu0 }
 0x19b   : >> { %v4762_v44 = vadd.f32 %v1720_v8, %v1527_v28 }
 0x19c   : >> { %v3520_v13 = vpop.f32.mrf.mxu1  ;;  %v3568_v46 = vpop.f32.mrf.mxu0 }
 0x19d   : >> { %v4764_v57 = vadd.f32 %v3568_v46, %v3520_v13 }
 0x19e   : >> { %v1539_v16 = vpop.f32.mrf.mxu1  ;;  %v1732_v27 = vpop.f32.mrf.mxu0 }
 0x1a0   : >> { %v3521_v3 = vpop.f32.mrf.mxu1  ;;  %v3569_v47 = vpop.f32.mrf.mxu0 }
 0x1a2   : >> { %v1541_v48 = vpop.f32.mrf.mxu1  ;;  %v1734_v25 = vpop.f32.mrf.mxu0 }
 0x1a3   : >> { %v4766_v1 = vadd.f32 %v1734_v25, %v1541_v48 }
 0x1a4   : >> { %v3524_v12 = vpop.f32.mrf.mxu1  ;;  %v3572_v33 = vpop.f32.mrf.mxu0 }
 0x1a5   : >> { %v4768_v0 = vadd.f32 %v3572_v33, %v3524_v12 }
 0x1a6   : >> { %v1553_v36 = vpop.f32.mrf.mxu1  ;;  %v1746_v22 = vpop.f32.mrf.mxu0 }
 0x1a8   : >> { %v3525_v51 = vpop.f32.mrf.mxu1  ;;  %v3573_v53 = vpop.f32.mrf.mxu0 }
 0x1aa   : >> { %v1555_v21 = vpop.f32.mrf.mxu1  ;;  %v1748_v29 = vpop.f32.mrf.mxu0 }
 0x1ab   : >> { %v4770_v35 = vadd.f32 %v1748_v29, %v1555_v21 }
 0x1ac   : >> { %v3528_v14 = vpop.f32.mrf.mxu1  ;;  %v3576_v15 = vpop.f32.mrf.mxu0 }
 0x1ad   : >> { %v4772_v38 = vadd.f32 %v3576_v15, %v3528_v14 }
 0x1ae   : >> { %v1567_v41 = vpop.f32.mrf.mxu1  ;;  %v1760_v20 = vpop.f32.mrf.mxu0 }
 0x1b0   : >> { %v3529_v45 = vpop.f32.mrf.mxu1  ;;  %v3577_v4 = vpop.f32.mrf.mxu0 }
 0x1b2   : >> { %v1569_v62 = vpop.f32.mrf.mxu1  ;;  %v1762_v5 = vpop.f32.mrf.mxu0 }
 0x1b3   : >> { %v4774_v6 = vadd.f32 %v1762_v5, %v1569_v62 }
 0x1b4   : >> { %v3532_v2 = vpop.f32.mrf.mxu1  ;;  %v3580_v37 = vpop.f32.mrf.mxu0 }
 0x1b5   : >> { %v4776_v43 = vadd.f32 %v3580_v37, %v3532_v2 }
 0x1b6   : >> { %v1581_v34 = vpop.f32.mrf.mxu1  ;;  %v1774_v30 = vpop.f32.mrf.mxu0 }
 0x1b8   : >> { %v3533_v42 = vpop.f32.mrf.mxu1  ;;  %v3581_v26 = vpop.f32.mrf.mxu0 }
 0x1ba   : >> { %v1583_v58 = vpop.f32.mrf.mxu1  ;;  %v1776_v61 = vpop.f32.mrf.mxu0 }
 0x1bb   : >> { %v4778_v28 = vadd.f32 %v1776_v61, %v1583_v58 }
 0x1bc   : >> { %v3536_v8 = vpop.f32.mrf.mxu1  ;;  %v3584_v13 = vpop.f32.mrf.mxu0 }
 0x1bd   : >> { %v4780_v46 = vadd.f32 %v3584_v13, %v3536_v8 }
 0x1be   : >> { %v1595_v16 = vpop.f32.mrf.mxu1  ;;  %v1788_v27 = vpop.f32.mrf.mxu0 }
 0x1c0   : >> { %v3537_v3 = vpop.f32.mrf.mxu1  ;;  %v3585_v47 = vpop.f32.mrf.mxu0 }
 0x1c2   : >> { %v1597_v48 = vpop.f32.mrf.mxu1  ;;  %v1790_v25 = vpop.f32.mrf.mxu0 }
 0x1c3   : >> { %v4782_v12 = vadd.f32 %v1790_v25, %v1597_v48 }
 0x1c4   : >> { %v3604_v33 = vpop.f32.mrf.mxu1  ;;  %v4784_v36 = vpop.f32.mrf.mxu0 }
 0x1c5   : >> { %v2012_v22 = vadd.f32 %v3604_v33, %v4744_v23 }
 0x1c6   : >> { %v1900_v51 = vpop.f32.mrf.mxu1  ;;  %v2159_v53 = vpop.f32.mrf.mxu0 }
 0x1c7   : >> { %v4788_v21 = vadd.f32 %v2012_v22, %v4649_v54 }
 0x1c8   : >> { %v3605_v29 = vpop.f32.mrf.mxu1  ;;  %v4790_v14 = vpop.f32.mrf.mxu0 }
 0x1ca   : >> { %v1902_v15 = vpop.f32.mrf.mxu1  ;;  %v4792_v41 = vpop.f32.mrf.mxu0 }
 0x1cb   : >> { %v2011_v20 = vadd.f32 %v1902_v15, %v4754_v56 }
 0x1cc   : >> { %v3608_v45 = vpop.f32.mrf.mxu1  ;;  %v4795_v4 = vpop.f32.mrf.mxu0 }
 0x1cd   : >> { %v4798_v62 = vadd.f32 %v2011_v20, %v4653_v55  ;;  %v2014_v23 = vadd.f32 %v3608_v45, %v4756_v11 }
 0x1ce   : >> { %v1914_v5 = vpop.f32.mrf.mxu1  ;;  %v2174_v2 = vpop.f32.mrf.mxu0 }
 0x1cf   : >> { %v4802_v54 = vadd.f32 %v2014_v23, %v4664_v60 }
 0x1d0   : >> { %v3609_v37 = vpop.f32.mrf.mxu1  ;;  %v4804_v34 = vpop.f32.mrf.mxu0 }
 0x1d2   : >> { %v1916_v30 = vpop.f32.mrf.mxu1  ;;  %v4806_v42 = vpop.f32.mrf.mxu0 }
 0x1d3   : >> { %v2013_v56 = vadd.f32 %v1916_v30, %v4758_v17 }
 0x1d4   : >> { %v3612_v26 = vpop.f32.mrf.mxu1  ;;  %v4809_v58 = vpop.f32.mrf.mxu0 }
 0x1d5   : >> { %v4812_v55 = vadd.f32 %v2013_v56, %v4668_v63  ;;  %v2016_v11 = vadd.f32 %v3612_v26, %v4760_v18 }
 0x1d6   : >> { %v1928_v61 = vpop.f32.mrf.mxu1  ;;  %v2189_v8 = vpop.f32.mrf.mxu0 }
 0x1d7   : >> { %v4816_v60 = vadd.f32 %v2016_v11, %v4679_v7 }
 0x1d8   : >> { %v3613_v13 = vpop.f32.mrf.mxu1  ;;  %v4818_v16 = vpop.f32.mrf.mxu0 }
 0x1da   : >> { %v1930_v27 = vpop.f32.mrf.mxu1  ;;  %v4820_v3 = vpop.f32.mrf.mxu0 }
 0x1db   : >> { %v2015_v17 = vadd.f32 %v1930_v27, %v4762_v44 }
 0x1dc   : >> { %v3616_v47 = vpop.f32.mrf.mxu1  ;;  %v4823_v48 = vpop.f32.mrf.mxu0 }
 0x1dd   : >> { %v4826_v63 = vadd.f32 %v2015_v17, %v4683_v10  ;;  %v2018_v18 = vadd.f32 %v3616_v47, %v4764_v57 }
 0x1de   : >> { %v1942_v25 = vpop.f32.mrf.mxu1  ;;  %v2204_v33 = vpop.f32.mrf.mxu0 }
 0x1df   : >> { %v4830_v7 = vadd.f32 %v2018_v18, %v4694_v19 }
 0x1e0   : >> { %v3617_v22 = vpop.f32.mrf.mxu1  ;;  %v4832_v51 = vpop.f32.mrf.mxu0 }
 0x1e2   : >> { %v1944_v53 = vpop.f32.mrf.mxu1  ;;  %v4834_v29 = vpop.f32.mrf.mxu0 }
 0x1e3   : >> { %v2017_v44 = vadd.f32 %v1944_v53, %v4766_v1 }
 0x1e4   : >> { %v3620_v15 = vpop.f32.mrf.mxu1  ;;  %v4837_v20 = vpop.f32.mrf.mxu0 }
 0x1e5   : >> { %v4840_v10 = vadd.f32 %v2017_v44, %v4698_v24  ;;  %v2020_v57 = vadd.f32 %v3620_v15, %v4768_v0 }
 0x1e6   : >> { %v1956_v45 = vpop.f32.mrf.mxu1  ;;  %v2219_v23 = vpop.f32.mrf.mxu0 }
 0x1e7   : >> { %v4844_v19 = vadd.f32 %v2020_v57, %v4709_v31 }
 0x1e8   : >> { %v3621_v5 = vpop.f32.mrf.mxu1  ;;  %v4846_v2 = vpop.f32.mrf.mxu0 }
 0x1ea   : >> { %v1958_v37 = vpop.f32.mrf.mxu1  ;;  %v4848_v30 = vpop.f32.mrf.mxu0 }
 0x1eb   : >> { %v2019_v1 = vadd.f32 %v1958_v37, %v4770_v35 }
 0x1ec   : >> { %v3624_v56 = vpop.f32.mrf.mxu1  ;;  %v4851_v26 = vpop.f32.mrf.mxu0 }
 0x1ed   : >> { %v4854_v24 = vadd.f32 %v2019_v1, %v4713_v32  ;;  %v2022_v0 = vadd.f32 %v3624_v56, %v4772_v38 }
 0x1ee   : >> { %v1970_v11 = vpop.f32.mrf.mxu1  ;;  %v2234_v61 = vpop.f32.mrf.mxu0 }
 0x1ef   : >> { %v4858_v31 = vadd.f32 %v2022_v0, %v4724_v39 }
 0x1f0   : >> { %v3625_v8 = vpop.f32.mrf.mxu1  ;;  %v4860_v13 = vpop.f32.mrf.mxu0 }
 0x1f2   : >> { %v1972_v27 = vpop.f32.mrf.mxu1  ;;  %v4862_v17 = vpop.f32.mrf.mxu0 }
 0x1f3   : >> { %v2021_v35 = vadd.f32 %v1972_v27, %v4774_v6 }
 0x1f4   : >> { %v3628_v47 = vpop.f32.mrf.mxu1  ;;  %v4865_v18 = vpop.f32.mrf.mxu0 }
 0x1f5   : >> { %v4868_v32 = vadd.f32 %v2021_v35, %v4728_v40  ;;  %v2024_v38 = vadd.f32 %v3628_v47, %v4776_v43 }
 0x1f6   : >> { %v1984_v25 = vpop.f32.mrf.mxu1  ;;  %v2249_v33 = vpop.f32.mrf.mxu0 }
 0x1f7   : >> { %v4872_v39 = vadd.f32 %v2024_v38, %v4737_v59 }
 0x1f8   : >> { %v3629_v22 = vpop.f32.mrf.mxu1  ;;  %v4874_v53 = vpop.f32.mrf.mxu0 }
 0x1fa   : >> { %v1986_v44 = vpop.f32.mrf.mxu1  ;;  %v4876_v15 = vpop.f32.mrf.mxu0 }
 0x1fb   : >> { %v2023_v6 = vadd.f32 %v1986_v44, %v4778_v28 }
 0x1fc   : >> { %v3632_v57 = vpop.f32.mrf.mxu1  ;;  %v4879_v45 = vpop.f32.mrf.mxu0 }
 0x1fd   : >> { %v4882_v40 = vadd.f32 %v2023_v6, %v4741_v9  ;;  %v2026_v43 = vadd.f32 %v3632_v57, %v4780_v46 }
 0x1fe   : >> { %v1998_v23 = vpop.f32.mrf.mxu1  ;;  %v2264_v5 = vpop.f32.mrf.mxu0 }
 0x1ff   : >> { %v4886_v59 = vadd.f32 %v2026_v43, %v4748_v52 }
 0x200   : >> { %v3633_v37 = vpop.f32.mrf.mxu1  ;;  %v4888_v1 = vpop.f32.mrf.mxu0 }
 0x202   : >> { %v2000_v56 = vpop.f32.mrf.mxu1  ;;  %v4890_v0 = vpop.f32.mrf.mxu0 }
 0x203   : >> { %v2025_v28 = vadd.f32 %v2000_v56, %v4782_v12 }
 0x204   : >> { %v3700_v11 = vpop.f32.mrf.mxu1  ;;  %v3748_v61 = vpop.f32.mrf.mxu0 }
 0x205   : >> { %v4894_v9 = vadd.f32 %v2025_v28, %v4752_v50  ;;  %v2368_v46 = vadd.f32 %v3700_v11, %v4784_v36 }
 0x206   : >> { %v2360_v8 = vpop.f32.mrf.mxu1  ;;  %v2578_v27 = vpop.f32.mrf.mxu0 }
 0x207   : >> { %v2698_v47 = vadd.f32 %v3748_v61, %v2368_v46  ;;  %v5091_v8 = vld [vmem:[#allocation11_spill] sm:$0xff] }
 0x208   : >> { %v3701_v35 = vpop.f32.mrf.mxu1  ;;  %v3749_v52 = vpop.f32.mrf.mxu0 }
 0x209   : >> { %v2371_v38 = vadd.f32 %v3701_v35, %v4790_v14  ;;  %v2722_v6 = vrot.slane %v2698_v47, 1 }
 0x20a   : >> { %v2362_v25 = vpop.f32.mrf.mxu1  ;;  %v2580_v33 = vpop.f32.mrf.mxu0 }
 0x20b   : >> { %v2699_v22 = vadd.f32 %v3749_v52, %v2371_v38  ;;  %v2363_v12 = vadd.f32 %v2362_v25, %v4792_v41 }
 0x20c   : >> { %v3704_v44 = vpop.f32.mrf.mxu1  ;;  %v3752_v50 = vpop.f32.mrf.mxu0 }
 0x20d   : >> { %v2723_v57 = vrot.slane %v2699_v22, 1  ;;  %v2697_v36 = vadd.f32 %v2580_v33, %v2363_v12  ;;  %v2383_v43 = vadd.f32 %v3704_v44, %v4795_v4 }
 0x20e   : >> { %v2375_v23 = vpop.f32.mrf.mxu1  ;;  %v2593_v5 = vpop.f32.mrf.mxu0 }
 0x20f   : >> { %v2760_v14 = vsel %vm2745_vm1, %v2722_v6, %v2723_v57  ;;  %v2721_v37 = vrot.slane %v2697_v36, 1  ;;  %v2701_v61 = vadd.f32 %v3752_v50, %v2383_v43 }
 0x210   : >> { %v2763_v56 = vadd.f32 %v2760_v14, %v4788_v21  ;;  %v3705_v41 = vpop.f32.mrf.mxu1  ;;  %v3753_v28 = vpop.f32.mrf.mxu0 }
 0x211   : >> { %v2761_v11 = vsel %vm2745_vm1, %v2721_v37, %v2722_v6  ;;  %v2386_v46 = vadd.f32 %v3705_v41, %v4804_v34  ;;  %v2725_v12 = vrot.slane %v2701_v61, 1 }
 0x212   : >> { %v2785_v4 = vadd.f32 %v5091_v8, %v2763_v56  ;;  %v2762_v27 = vadd.f32 %v2761_v11, %v4798_v62  ;;  %v2377_v35 = vpop.f32.mrf.mxu1  ;;  %v2595_v52 = vpop.f32.mrf.mxu0 }
 0x213   : >> { %v2702_v47 = vadd.f32 %v3753_v28, %v2386_v46  ;;  %v2378_v21 = vadd.f32 %v2377_v35, %v4806_v42 }
 0x214   : >> { %v2801_v38 = vmax.f32 %v2785_v4, 0.0  ;;  %v2784_v25 = vadd.f32 %v5091_v8, %v2762_v27  ;;  %v3708_v33 = vpop.f32.mrf.mxu1  ;;  %v3756_v22 = vpop.f32.mrf.mxu0 }
 0x215   : >> { %v2726_v34 = vrot.slane %v2702_v47, 1  ;;  %v2700_v44 = vadd.f32 %v2595_v52, %v2378_v21  ;;  %v2398_v50 = vadd.f32 %v3708_v33, %v4809_v58 }
 0x216   : >> { %2819 = vst [vmem:[%s4911_s20 + $0x8] sm:$0xff] %v2801_v38  ;;  %v2800_v62 = vmax.f32 %v2784_v25, 0.0  ;;  %v2390_v6 = vpop.f32.mrf.mxu1  ;;  %v2608_v57 = vpop.f32.mrf.mxu0 }
 0x217   : >> { %v2758_v36 = vsel %vm2745_vm1, %v2725_v12, %v2726_v34  ;;  %v2724_v43 = vrot.slane %v2700_v44, 1  ;;  %v2704_v37 = vadd.f32 %v3756_v22, %v2398_v50 }
 0x218   : >> { %2818 = vst [vmem:[%s4911_s20] sm:$0xff] %v2800_v62  ;;  %v2765_v42 = vadd.f32 %v2758_v36, %v4802_v54  ;;  %v3709_v23 = vpop.f32.mrf.mxu1  ;;  %v3757_v5 = vpop.f32.mrf.mxu0 }
 0x219   : >> { %v2759_v14 = vsel %vm2745_vm1, %v2724_v43, %v2725_v12  ;;  %v2401_v58 = vadd.f32 %v3709_v23, %v4818_v16  ;;  %v2728_v52 = vrot.slane %v2704_v37, 1 }
 0x21a   : >> { %v2787_v56 = vadd.f32 %v5091_v8, %v2765_v42  ;;  %v2764_v41 = vadd.f32 %v2759_v14, %v4812_v55  ;;  %v2392_v28 = vpop.f32.mrf.mxu1  ;;  %v2610_v11 = vpop.f32.mrf.mxu0 }
 0x21b   : >> { %v2705_v61 = vadd.f32 %v3757_v5, %v2401_v58  ;;  %v2393_v46 = vadd.f32 %v2392_v28, %v4820_v3 }
 0x21c   : >> { %v2803_v54 = vmax.f32 %v2787_v56, 0.0  ;;  %v2786_v4 = vadd.f32 %v5091_v8, %v2764_v41  ;;  %v3712_v27 = vpop.f32.mrf.mxu1  ;;  %v3760_v35 = vpop.f32.mrf.mxu0 }
 0x21d   : >> { %v2729_v47 = vrot.slane %v2705_v61, 1  ;;  %v2703_v21 = vadd.f32 %v2610_v11, %v2393_v46  ;;  %v2413_v16 = vadd.f32 %v3712_v27, %v4823_v48 }
 0x21e   : >> { %2821 = vst [vmem:[%s4911_s20 + $0x18] sm:$0xff] %v2803_v54  ;;  %v2802_v38 = vmax.f32 %v2786_v4, 0.0  ;;  %v2405_v25 = vpop.f32.mrf.mxu1  ;;  %v2623_v55 = vpop.f32.mrf.mxu0 }
 0x21f   : >> { %v2756_v33 = vsel %vm2745_vm1, %v2728_v52, %v2729_v47  ;;  %v2727_v22 = vrot.slane %v2703_v21, 1  ;;  %v2707_v50 = vadd.f32 %v3760_v35, %v2413_v16 }
 0x220   : >> { %2820 = vst [vmem:[%s4911_s20 + $0x10] sm:$0xff] %v2802_v38  ;;  %v2767_v3 = vadd.f32 %v2756_v33, %v4816_v60  ;;  %v3713_v12 = vpop.f32.mrf.mxu1  ;;  %v3761_v34 = vpop.f32.mrf.mxu0 }
 0x221   : >> { %v2757_v44 = vsel %vm2745_vm1, %v2727_v22, %v2728_v52  ;;  %v2416_v48 = vadd.f32 %v3713_v12, %v4832_v51  ;;  %v2731_v37 = vrot.slane %v2707_v50, 1 }
 0x222   : >> { %v2789_v62 = vadd.f32 %v5091_v8, %v2767_v3  ;;  %v2766_v6 = vadd.f32 %v2757_v44, %v4826_v63  ;;  %v2407_v57 = vpop.f32.mrf.mxu1  ;;  %v2625_v36 = vpop.f32.mrf.mxu0 }
 0x223   : >> { %v2708_v43 = vadd.f32 %v3761_v34, %v2416_v48  ;;  %v2408_v42 = vadd.f32 %v2407_v57, %v4834_v29 }
 0x224   : >> { %v2805_v60 = vmax.f32 %v2789_v62, 0.0  ;;  %v2788_v23 = vadd.f32 %v5091_v8, %v2766_v6  ;;  %v3716_v5 = vpop.f32.mrf.mxu1  ;;  %v3764_v14 = vpop.f32.mrf.mxu0 }
 0x225   : >> { %v2732_v58 = vrot.slane %v2708_v43, 1  ;;  %v2706_v56 = vadd.f32 %v2625_v36, %v2408_v42  ;;  %v2428_v51 = vadd.f32 %v3716_v5, %v4837_v20 }
 0x226   : >> { %2823 = vst [vmem:[%s4911_s20 + $0x28] sm:$0xff] %v2805_v60  ;;  %v2804_v41 = vmax.f32 %v2788_v23, 0.0  ;;  %v2420_v28 = vpop.f32.mrf.mxu1  ;;  %v2638_v63 = vpop.f32.mrf.mxu0 }
 0x227   : >> { %v2754_v11 = vsel %vm2745_vm1, %v2731_v37, %v2732_v58  ;;  %v2730_v61 = vrot.slane %v2706_v56, 1  ;;  %v2710_v27 = vadd.f32 %v3764_v14, %v2428_v51 }
 0x228   : >> { %2822 = vst [vmem:[%s4911_s20 + $0x20] sm:$0xff] %v2804_v41  ;;  %v2769_v29 = vadd.f32 %v2754_v11, %v4830_v7  ;;  %v3717_v46 = vpop.f32.mrf.mxu1  ;;  %v3765_v54 = vpop.f32.mrf.mxu0 }
 0x229   : >> { %v2755_v4 = vsel %vm2745_vm1, %v2730_v61, %v2731_v37  ;;  %v2431_v20 = vadd.f32 %v3717_v46, %v4846_v2  ;;  %v2734_v22 = vrot.slane %v2710_v27, 1 }
 0x22a   : >> { %v2791_v35 = vadd.f32 %v5091_v8, %v2769_v29  ;;  %v2768_v52 = vadd.f32 %v2755_v4, %v4840_v10  ;;  %v2422_v47 = vpop.f32.mrf.mxu1  ;;  %v2640_v21 = vpop.f32.mrf.mxu0 }
 0x22b   : >> { %v2711_v16 = vadd.f32 %v3765_v54, %v2431_v20  ;;  %v2423_v38 = vadd.f32 %v2422_v47, %v4848_v30 }
 0x22c   : >> { %v2807_v7 = vmax.f32 %v2791_v35, 0.0  ;;  %v2790_v25 = vadd.f32 %v5091_v8, %v2768_v52  ;;  %v3720_v55 = vpop.f32.mrf.mxu1  ;;  %v3768_v33 = vpop.f32.mrf.mxu0 }
 0x22d   : >> { %v2735_v3 = vrot.slane %v2711_v16, 1  ;;  %v2709_v12 = vadd.f32 %v2640_v21, %v2423_v38  ;;  %v2443_v2 = vadd.f32 %v3720_v55, %v4851_v26 }
 0x22e   : >> { %2825 = vst [vmem:[%s4911_s20 + $0x38] sm:$0xff] %v2807_v7  ;;  %v2806_v34 = vmax.f32 %v2790_v25, 0.0  ;;  %v2435_v44 = vpop.f32.mrf.mxu1  ;;  %v2653_v10 = vpop.f32.mrf.mxu0 }
 0x22f   : >> { %v2752_v50 = vsel %vm2745_vm1, %v2734_v22, %v2735_v3  ;;  %v2733_v48 = vrot.slane %v2709_v12, 1  ;;  %v2713_v36 = vadd.f32 %v3768_v33, %v2443_v2 }
 0x230   : >> { %2824 = vst [vmem:[%s4911_s20 + $0x30] sm:$0xff] %v2806_v34  ;;  %v2771_v30 = vadd.f32 %v2752_v50, %v4844_v19  ;;  %v3721_v62 = vpop.f32.mrf.mxu1  ;;  %v3769_v6 = vpop.f32.mrf.mxu0 }
 0x231   : >> { %v2753_v57 = vsel %vm2745_vm1, %v2733_v48, %v2734_v22  ;;  %v2446_v26 = vadd.f32 %v3721_v62, %v4860_v13  ;;  %v2737_v51 = vrot.slane %v2713_v36, 1 }
 0x232   : >> { %v2793_v43 = vadd.f32 %v5091_v8, %v2771_v30  ;;  %v2770_v42 = vadd.f32 %v2753_v57, %v4854_v24  ;;  %v2437_v60 = vpop.f32.mrf.mxu1  ;;  %v2655_v23 = vpop.f32.mrf.mxu0 }
 0x233   : >> { %v2714_v5 = vadd.f32 %v3769_v6, %v2446_v26  ;;  %v2438_v14 = vadd.f32 %v2437_v60, %v4862_v17 }
 0x234   : >> { %v2809_v19 = vmax.f32 %v2793_v43, 0.0  ;;  %v2792_v37 = vadd.f32 %v5091_v8, %v2770_v42  ;;  %v3724_v58 = vpop.f32.mrf.mxu1  ;;  %v3772_v56 = vpop.f32.mrf.mxu0 }
 0x235   : >> { %v2738_v41 = vrot.slane %v2714_v5, 1  ;;  %v2712_v28 = vadd.f32 %v2655_v23, %v2438_v14  ;;  %v2458_v13 = vadd.f32 %v3724_v58, %v4865_v18 }
 0x236   : >> { %2827 = vst [vmem:[%s4911_s20 + $0x48] sm:$0xff] %v2809_v19  ;;  %v2808_v63 = vmax.f32 %v2792_v37, 0.0  ;;  %v2450_v11 = vpop.f32.mrf.mxu1  ;;  %v2668_v24 = vpop.f32.mrf.mxu0 }
 0x237   : >> { %v2750_v61 = vsel %vm2745_vm1, %v2737_v51, %v2738_v41  ;;  %v2736_v29 = vrot.slane %v2712_v28, 1  ;;  %v2716_v27 = vadd.f32 %v3772_v56, %v2458_v13 }
 0x238   : >> { %2826 = vst [vmem:[%s4911_s20 + $0x40] sm:$0xff] %v2808_v63  ;;  %v2773_v17 = vadd.f32 %v2750_v61, %v4858_v31  ;;  %v3725_v46 = vpop.f32.mrf.mxu1  ;;  %v3773_v54 = vpop.f32.mrf.mxu0 }
 0x239   : >> { %v2751_v4 = vsel %vm2745_vm1, %v2736_v29, %v2737_v51  ;;  %v2461_v18 = vadd.f32 %v3725_v46, %v4874_v53  ;;  %v2740_v55 = vrot.slane %v2716_v27, 1 }
 0x23a   : >> { %v2795_v20 = vadd.f32 %v5091_v8, %v2773_v17  ;;  %v2772_v35 = vadd.f32 %v2751_v4, %v4868_v32  ;;  %v2452_v52 = vpop.f32.mrf.mxu1  ;;  %v2670_v47 = vpop.f32.mrf.mxu0 }
 0x23b   : >> { %v2717_v21 = vadd.f32 %v3773_v54, %v2461_v18  ;;  %v2453_v16 = vadd.f32 %v2452_v52, %v4876_v15 }
 0x23c   : >> { %v2811_v31 = vmax.f32 %v2795_v20, 0.0  ;;  %v2794_v38 = vadd.f32 %v5091_v8, %v2772_v35  ;;  %v3728_v7 = vpop.f32.mrf.mxu1  ;;  %v3776_v25 = vpop.f32.mrf.mxu0 }
 0x23d   : >> { %v2741_v33 = vrot.slane %v2717_v21, 1  ;;  %v2715_v22 = vadd.f32 %v2670_v47, %v2453_v16  ;;  %v2473_v53 = vadd.f32 %v3728_v7, %v4879_v45 }
 0x23e   : >> { %2829 = vst [vmem:[%s4911_s20 + $0x58] sm:$0xff] %v2811_v31  ;;  %v2810_v3 = vmax.f32 %v2794_v38, 0.0  ;;  %v2465_v12 = vpop.f32.mrf.mxu1  ;;  %v2683_v32 = vpop.f32.mrf.mxu0 }
 0x23f   : >> { %v2748_v2 = vsel %vm2745_vm1, %v2740_v55, %v2741_v33  ;;  %v2739_v34 = vrot.slane %v2715_v22, 1  ;;  %v2719_v48 = vadd.f32 %v3776_v25, %v2473_v53 }
 0x240   : >> { %2828 = vst [vmem:[%s4911_s20 + $0x50] sm:$0xff] %v2810_v3  ;;  %v2775_v15 = vadd.f32 %v2748_v2, %v4872_v39  ;;  %v3729_v44 = vpop.f32.mrf.mxu1  ;;  %v3777_v10 = vpop.f32.mrf.mxu0 }
 0x241   : >> { %v2749_v50 = vsel %vm2745_vm1, %v2739_v34, %v2740_v55  ;;  %v2476_v45 = vadd.f32 %v3729_v44, %v4888_v1  ;;  %v2743_v42 = vrot.slane %v2719_v48, 1 }
 0x242   : >> { %v2797_v30 = vadd.f32 %v5091_v8, %v2775_v15  ;;  %v2774_v62 = vadd.f32 %v2749_v50, %v4882_v40  ;;  %v2467_v6 = vpop.f32.mrf.mxu1  ;;  %v2685_v43 = vpop.f32.mrf.mxu0 }
 0x243   : >> { %v2720_v57 = vadd.f32 %v3777_v10, %v2476_v45  ;;  %v2468_v36 = vadd.f32 %v2467_v6, %v4890_v0 }
 0x244   : >> { %v2813_v26 = vmax.f32 %v2797_v30, 0.0  ;;  %v2796_v39 = vadd.f32 %v5091_v8, %v2774_v62 }
 0x245   : >> { %v2744_v60 = vrot.slane %v2720_v57, 1  ;;  %v2718_v23 = vadd.f32 %v2685_v43, %v2468_v36 }
 0x246   : >> { %2831 = vst [vmem:[%s4911_s20 + $0x68] sm:$0xff] %v2813_v26  ;;  %v2812_v1 = vmax.f32 %v2796_v39, 0.0 }
 0x247   : >> { %v2746_v5 = vsel %vm2745_vm1, %v2743_v42, %v2744_v60  ;;  %v2742_v14 = vrot.slane %v2718_v23, 1 }
 0x248   : >> { %2830 = vst [vmem:[%s4911_s20 + $0x60] sm:$0xff] %v2812_v1  ;;  %v2777_v40 = vadd.f32 %v2746_v5, %v4886_v59 }
 0x249   : >> { %v2747_v0 = vsel %vm2745_vm1, %v2742_v14, %v2743_v42 }
 0x24a   : >> { %v2799_v19 = vadd.f32 %v5091_v8, %v2777_v40  ;;  %v2776_v37 = vadd.f32 %v2747_v0, %v4894_v9 }
 0x24c   : >> { %v2815_v58 = vmax.f32 %v2799_v19, 0.0  ;;  %v2798_v56 = vadd.f32 %v5091_v8, %v2776_v37  ;;  %256 = sbr.rel (!%p254_p1) target bundleno = 67 (0x43), region = 104 }
 0x24e   : >> { %2833 = vst [vmem:[%s4911_s20 + $0x78] sm:$0xff] %v2815_v58  ;;  %v2814_v51 = vmax.f32 %v2798_v56, 0.0 }
 0x250   : >> { %2832 = vst [vmem:[%s4911_s20 + $0x70] sm:$0xff] %v2814_v51 }
 0x251   : > { %4072 = shalt.err (!%p4069_p6)
}
 0x252   : > { %s4073_s26 = scalar_lea.hbm %s5012_s9, 4096  ;;  %s4077_s24 = scalar_lea.hbm %s5066_s3, 8192 }
 0x253   : > { %p4074_p9 = scmp.ne.s32.totalorder %s5012_s9, %s4073_s26  ;;  %p4078_p3 = scmp.lt.s32.totalorder %s5012_s9, %s5066_s3 }
 0x254   : > { %p4079_p1 = scmp.lt.s32.totalorder %s4077_s24, %s4073_s26 }
 0x255   : > { %p4075_p12 = pnand %p4074_p9, %p4266_p13 }
 0x256   : > { %p4080_p8 = por %p4079_p1, %p4078_p3 }
 0x257   : > { %p4076_p0 = pneg %p4075_p12 }
 0x259   : > { %p4081_p11 = pnand %p4080_p8, %p4076_p0 }
 0x25b   : > { %4084 = shalt.err (!%p4081_p11)
}
 0x25c   : > { %s4158_s20 = smov 128   ;;  %s4159_s22 = smov 8  }
 0x25d   : > { %3803 = dma.vmem_to_hbm [thread:$0]  (%p4266_p13), %s5015_s7, 4096, %s5012_s9, %s2835_s11, %s4158_s20, %s4158_s20, %s4159_s22  }
 0x25e PF: > { %s2867_s5 = sand.u32 1, %s4127_s12   ;;  %p5092_p2 = scmp.ne.s32.totalorder %s5074_s23, 0 }
 0x25f   : > { %s2868_s6 = scalar_lea.sflag [#allocation4], %s2867_s5 }
 0x260   : > { %p3814_p5 = pnand %p2982_p10, %p5092_p2 }
 0x262   : > { %p3815_p7 = pneg %p3814_p5 }
 0x264   : > { %4122 = dma.done.wait (%p3815_p7), %s2868_s6, 4096  }
 0x265   : > { %4124 = vsyncadd (%p3815_p7), %s2868_s6, 4294963200  ;;  %s20_s17 = sadd.s32 1, %s4147_s17   ;;  %s5093_s12 = smov %s4131_s13 }
 0x266   : > { %p17_p4 = scmp.ge.s32.totalorder %s20_s17, 4   ;;  %s5094_s13 = smov %s4135_s14 }
 0x267   : > { %s5095_s14 = smov %s4275_s18  ;;  %s5096_s15 = smov %s4143_s16 }
 0x268   : > { %s5097_s16 = smov %s5099_s28  ;;  %19 = sbr.rel (!%p17_p4) target bundleno = 7 (0x7), region = 115 }
 0x26d   :  { %2873 = vsyncpa [#allocation3], 1 }
 0x26e   :  { %2875 = vsyncpa [#allocation3 + $0x1], 1 }
 0x26f   :  { %2876 = vsyncpa [#allocation6], 1 }
 0x270   :  { %2877 = vsyncpa [#allocation4], 1 }
 0x271   :  { %2879 = vsyncpa [#allocation4 + $0x1], 1 }

</bundles_post_ra>
